<compile_context>
chip_gen: v6e
topology: v6e:2x2x1
jax: 0.10.0
libtpu: 0.0.40
codegen_flags: <defaults>
</compile_context>

<pallas_src>
import functools
import math

import numpy as np
import jax
import jax.numpy as jnp
from jax import lax
from jax.experimental import pallas as pl
from jax.experimental.pallas import tpu as pltpu  # noqa: F401  (TPU backend)

# ---------------- config (small, consistent with a BERT-style encoder) --------------
VOCAB = 100
HIDDEN = 32
HEADS = 2
HEAD_DIM = HIDDEN // HEADS
INTER = 64
LAYERS = 2
MAX_POS = 64
SEQ = 8
BATCH = 2
CLASSES = 3
LN_EPS = 1e-12

# rows inside the packed per-layer "small parameter" slab (LAYERS, 8, 3*HIDDEN)
_R_BQKV, _R_BO, _R_LN1G, _R_LN1B, _R_BI, _R_BO2, _R_LN2G, _R_LN2B = range(8)
# rows inside the packed "misc" slab (4, HIDDEN)
_M_EMB_LNG, _M_EMB_LNB, _M_POOL_B, _M_OUT_B = range(4)


# ---------------- in-kernel helpers ----------------
def _ln(x, g, b):
    """LayerNorm over the last axis (f32); g, b broadcast as (1, H)."""
    mean = jnp.mean(x, axis=-1, keepdims=True)
    xc = x - mean
    var = jnp.mean(xc * xc, axis=-1, keepdims=True)
    inv = lax.rsqrt(var + LN_EPS)
    return xc * inv * g + b


def _gelu(y):
    # BERT gelu (tanh approximation).
    # TODO(synk): HF BERT default 'gelu' is the exact erf form; tanh approx differs slightly.
    c = math.sqrt(2.0 / math.pi)
    return 0.5 * y * (1.0 + jnp.tanh(c * (y + 0.044715 * y * y * y)))


def _mm(a, b):
    """MXU matmul: bf16 operands, f32 accumulation."""
    return jnp.dot(a.astype(jnp.bfloat16), b.astype(jnp.bfloat16),
                   preferred_element_type=jnp.float32)


# ---------------- the single fused kernel ----------------
def _bert_fused_kernel(
    ids_ref,        # (B*S, 1)  int32   token ids
    amask_ref,      # (1, B*S)  int32   attention mask (1 = keep)
    bias_ref,       # (B*S, B*S) f32    block-diagonal bias (0 same-seq, -1e4 cross-seq)
    word_emb_ref,   # (VOCAB, H)   bf16
    pos_emb_ref,    # (MAX_POS, H) f32
    type_emb_ref,   # (2, H)       f32
    wqkv_ref,       # (L, H, 3H)   bf16  fused Q|K|V projection
    wo_ref,         # (L, H, H)    bf16
    wi_ref,         # (L, H, INTER) bf16
    wo2_ref,        # (L, INTER, H) bf16
    pool_w_ref,     # (H, H)       bf16
    out_w_ref,      # (H, CLASSES) bf16
    small_ref,      # (L, 8, 3H)   f32   packed per-layer biases / LN params
    misc_ref,       # (4, H)       f32   emb LN gamma/beta, pooler bias, classifier bias
    logits_ref,     # out: (B, CLASSES) f32
    *, batch, seq,
):
    f32 = jnp.float32
    bf16 = jnp.bfloat16
    n_tok = batch * seq
    scale = 1.0 / math.sqrt(HEAD_DIM)

    misc = misc_ref[...]                                           # (4, H)

    # ---- embeddings: one-hot token gather on the MXU + position/type add ----
    ids = ids_ref[...]                                             # (B*S, 1) i32
    iota = lax.broadcasted_iota(jnp.int32, (n_tok, VOCAB), 1)
    onehot = jnp.where(iota == ids, 1.0, 0.0).astype(bf16)         # (B*S, VOCAB)
    word = jnp.dot(onehot, word_emb_ref[...],
                   preferred_element_type=f32)                     # (B*S, H)
    # token_type_ids hardcoded to 0 (matches the reference call signature).
    # TODO(synk): plumb token_type_ids through if non-zero segment ids are needed.
    pos_type = pos_emb_ref[0:seq, :] + type_emb_ref[0:1, :]        # (S, H)
    x = word + jnp.tile(pos_type, (batch, 1))                      # (B*S, H)
    x = _ln(x, misc[_M_EMB_LNG:_M_EMB_LNG + 1, :],
            misc[_M_EMB_LNB:_M_EMB_LNB + 1, :])                    # embedding LayerNorm

    # ---- additive attention mask built in-kernel:
    #      key-padding mask + compile-time block-diagonal cross-sequence bias ----
    keymask = (1.0 - amask_ref[...].astype(f32)) * -10000.0        # (1, B*S)
    mask2d = bias_ref[...] + keymask                               # (B*S, B*S)

    for l in range(LAYERS):                                        # static unroll (L=2)
        small = small_ref[l]                                       # (8, 3H) f32
        bqkv = small[_R_BQKV:_R_BQKV + 1, :]
        bo = small[_R_BO:_R_BO + 1, 0:HIDDEN]
        ln1g = small[_R_LN1G:_R_LN1G + 1, 0:HIDDEN]
        ln1b = small[_R_LN1B:_R_LN1B + 1, 0:HIDDEN]
        bi = small[_R_BI:_R_BI + 1, 0:INTER]
        bo2 = small[_R_BO2:_R_BO2 + 1, 0:HIDDEN]
        ln2g = small[_R_LN2G:_R_LN2G + 1, 0:HIDDEN]
        ln2b = small[_R_LN2B:_R_LN2B + 1, 0:HIDDEN]

        # ---- fused QKV projection: one (B*S, H) @ (H, 3H) matmul ----
        qkv = _mm(x, wqkv_ref[l]) + bqkv                           # (B*S, 3H) f32

        # ---- head split: (HEADS, B*S, D); attention batched over heads,
        #      cross-sequence pairs suppressed by the block-diagonal bias ----
        def _split(base):
            parts = [qkv[:, base + h * HEAD_DIM: base + (h + 1) * HEAD_DIM]
                     for h in range(HEADS)]
            return jnp.stack(parts, axis=0)                        # (HEADS, B*S, D)

        q = _split(0)
        k = _split(HIDDEN)
        v = _split(2 * HIDDEN)

        # scores: contraction folded into dot_general (no explicit k.T)
        s = jnp.einsum('bqd,bkd->bqk', q.astype(bf16), k.astype(bf16),
                       preferred_element_type=f32) * scale         # (HEADS, B*S, B*S)
        s = s + mask2d[None, :, :]
        s = s - jnp.max(s, axis=-1, keepdims=True)
        p = jnp.exp(s)
        p = p * pl.reciprocal(jnp.sum(p, axis=-1, keepdims=True), approx=True)
        ctx = jnp.einsum('bqk,bkd->bqd', p.astype(bf16), v.astype(bf16),
                         preferred_element_type=f32)               # (HEADS, B*S, D)

        # merge heads back onto the lane axis: (B*S, H)
        ctx = jnp.concatenate([ctx[h] for h in range(HEADS)], axis=-1)

        # ---- attention output projection + residual + LN1 ----
        attn_out = _mm(ctx, wo_ref[l]) + bo
        x = _ln(attn_out + x, ln1g, ln1b)

        # ---- FFN + residual + LN2 ----
        inter = _gelu(_mm(x, wi_ref[l]) + bi)
        ffn = _mm(inter, wo2_ref[l]) + bo2
        x = _ln(ffn + x, ln2g, ln2b)

    # ---- epilogue: pooler (tanh on CLS) + dropout(identity) + classifier ----
    cls = jnp.concatenate([x[b * seq:b * seq + 1, :] for b in range(batch)], axis=0)
    pooled = jnp.tanh(_mm(cls, pool_w_ref[...]) + misc[_M_POOL_B:_M_POOL_B + 1, :])
    # nn.Dropout(0.3): inference-mode identity.
    # TODO(synk): training-mode stochastic dropout not implemented (would use pltpu.prng_*).
    logits = _mm(pooled, out_w_ref[...]) + misc[_M_OUT_B:_M_OUT_B + 1, 0:CLASSES]
    logits_ref[...] = logits.astype(logits_ref.dtype)


def _full_spec(arr):
    """Whole-array VMEM block (grid-less call)."""
    idx = (0,) * arr.ndim
    return pl.BlockSpec(arr.shape, lambda idx=idx: idx)


# ---------------- parameters (packed slabs, bf16 matmul weights) ----------------
def init_params(key):
    keys = iter(jax.random.split(key, 12))

    def w(shape, dtype=jnp.bfloat16):
        return (0.02 * jax.random.normal(next(keys), shape, jnp.float32)).astype(dtype)

    w3 = 3 * HIDDEN
    # packed per-layer small params: biases zero, LN gammas one.
    small = jnp.zeros((LAYERS, 8, w3), jnp.float32)
    small = small.at[:, _R_LN1G, :HIDDEN].set(1.0)
    small = small.at[:, _R_LN2G, :HIDDEN].set(1.0)

    misc = jnp.zeros((4, HIDDEN), jnp.float32)
    misc = misc.at[_M_EMB_LNG, :].set(1.0)

    return {
        "word_emb": w((VOCAB, HIDDEN)),
        "pos_emb": w((MAX_POS, HIDDEN), jnp.float32),
        "type_emb": w((2, HIDDEN), jnp.float32),
        "wqkv": w((LAYERS, HIDDEN, w3)),
        "wo": w((LAYERS, HIDDEN, HIDDEN)),
        "wi": w((LAYERS, HIDDEN, INTER)),
        "wo2": w((LAYERS, INTER, HIDDEN)),
        "pool_w": w((HIDDEN, HIDDEN)),
        "out_w": w((HIDDEN, CLASSES)),
        "layer_small": small,
        "misc": misc,
    }


# ---------------- model wrapper: a single grid-less pallas_call ----------------
@jax.jit
def bert_classifier_forward(params, input_ids, attention_mask):
    B, S = input_ids.shape
    n_tok = B * S

    # Free row-major reshapes so the kernel sees lane/sublane-friendly 2-D operands.
    ids2d = input_ids.reshape(n_tok, 1).astype(jnp.int32)
    amask = attention_mask.reshape(1, n_tok).astype(jnp.int32)

    # Compile-time constant block-diagonal bias: 0 within a sequence, -1e4 across
    # sequences (so heads can be batched over the flattened B*S token axis).
    bias = np.full((n_tok, n_tok), -10000.0, dtype=np.float32)
    for b in range(B):
        bias[b * S:(b + 1) * S, b * S:(b + 1) * S] = 0.0
    attn_bias = jnp.asarray(bias)

    inputs = [
        ids2d, amask, attn_bias,
        params["word_emb"], params["pos_emb"], params["type_emb"],
        params["wqkv"], params["wo"], params["wi"], params["wo2"],
        params["pool_w"], params["out_w"],
        params["layer_small"], params["misc"],
    ]

    return pl.pallas_call(
        functools.partial(_bert_fused_kernel, batch=B, seq=S),
        out_shape=jax.ShapeDtypeStruct((B, CLASSES), jnp.float32),
        in_specs=[_full_spec(a) for a in inputs],
        out_specs=pl.BlockSpec((B, CLASSES), lambda: (0, 0)),
    )(*inputs)


if __name__ == "__main__":
    key = jax.random.PRNGKey(0)
    k_ids, k_params = jax.random.split(key)

    input_ids = jax.random.randint(k_ids, (BATCH, SEQ), 0, VOCAB, dtype=jnp.int32)
    attention_mask = jnp.ones((BATCH, SEQ), dtype=jnp.int32).at[1, -2:].set(0)

    params = init_params(k_params)

    logits = bert_classifier_forward(params, input_ids, attention_mask)
    logits = jax.block_until_ready(logits)
    assert logits.shape == (BATCH, CLASSES)
    assert bool(jnp.all(jnp.isfinite(logits)))
    print("KERNEL_OK")
</pallas_src>

<mosaic_0001>
module attributes {stable_mosaic.version = 11 : i64} {
  func.func @_bert_fused_kernel(%arg0: memref<16x1xi32, #tpu.memory_space<vmem>>, %arg1: memref<1x16xi32, #tpu.memory_space<vmem>>, %arg2: memref<16x16xf32, #tpu.memory_space<vmem>>, %arg3: memref<100x32xbf16, #tpu.memory_space<vmem>>, %arg4: memref<64x32xf32, #tpu.memory_space<vmem>>, %arg5: memref<2x32xf32, #tpu.memory_space<vmem>>, %arg6: memref<2x32x96xbf16, #tpu.memory_space<vmem>>, %arg7: memref<2x32x32xbf16, #tpu.memory_space<vmem>>, %arg8: memref<2x32x64xbf16, #tpu.memory_space<vmem>>, %arg9: memref<2x64x32xbf16, #tpu.memory_space<vmem>>, %arg10: memref<32x32xbf16, #tpu.memory_space<vmem>>, %arg11: memref<32x3xbf16, #tpu.memory_space<vmem>>, %arg12: memref<2x8x96xf32, #tpu.memory_space<vmem>>, %arg13: memref<4x32xf32, #tpu.memory_space<vmem>>, %arg14: memref<2x3xf32, #tpu.memory_space<vmem>>) attributes {dimension_semantics = [], scalar_prefetch = 0 : i64, scratch_operands = 0 : i64, tpu.core_type = #tpu.core_type<tc>} {
    %c0 = arith.constant 0 : index
    %c0_0 = arith.constant 0 : index
    %0 = vector.load %arg13[%c0, %c0_0] : memref<4x32xf32, #tpu.memory_space<vmem>>, vector<4x32xf32>
    %c0_1 = arith.constant 0 : index
    %c0_2 = arith.constant 0 : index
    %1 = vector.load %arg0[%c0_1, %c0_2] : memref<16x1xi32, #tpu.memory_space<vmem>>, vector<16x1xi32>
    %2 = tpu.iota {dimensions = array<i32: 1>} : vector<16x100xi32>
    %3 = vector.broadcast %1 : vector<16x1xi32> to vector<16x100xi32>
    %4 = arith.cmpi eq, %2, %3 : vector<16x100xi32>
    %cst = arith.constant 1.000000e+00 : f32
    %cst_3 = arith.constant 0.000000e+00 : f32
    %5 = vector.broadcast %cst : f32 to vector<16x100xf32>
    %6 = vector.broadcast %cst_3 : f32 to vector<16x100xf32>
    %7 = arith.select %4, %5, %6 : vector<16x100xi1>, vector<16x100xf32>
    %8 = arith.truncf %7 : vector<16x100xf32> to vector<16x100xbf16>
    %c0_4 = arith.constant 0 : index
    %c0_5 = arith.constant 0 : index
    %9 = vector.load %arg3[%c0_4, %c0_5] : memref<100x32xbf16, #tpu.memory_space<vmem>>, vector<100x32xbf16>
    %cst_6 = arith.constant dense<0.000000e+00> : vector<16x32xf32>
    %10 = tpu.matmul %8, %9, %cst_6 {dimension_numbers = #tpu.dot_dimension_numbers<[1], [0], [0], [1], [0, 0, 1, 1], [], []>} : vector<16x100xbf16>, vector<100x32xbf16>, vector<16x32xf32> -> vector<16x32xf32>
    %c0_7 = arith.constant 0 : index
    %c0_8 = arith.constant 0 : index
    %11 = vector.load %arg4[%c0_7, %c0_8] : memref<64x32xf32, #tpu.memory_space<vmem>>, vector<8x32xf32>
    %c0_9 = arith.constant 0 : index
    %c0_10 = arith.constant 0 : index
    %12 = vector.load %arg5[%c0_9, %c0_10] : memref<2x32xf32, #tpu.memory_space<vmem>>, vector<1x32xf32>
    %13 = vector.broadcast %12 : vector<1x32xf32> to vector<8x32xf32>
    %14 = arith.addf %11, %13 : vector<8x32xf32>
    %15 = tpu.concatenate %14, %14 in 0 : vector<8x32xf32>, vector<8x32xf32> -> vector<16x32xf32>
    %16 = arith.addf %10, %15 : vector<16x32xf32>
    %17 = vector.extract_strided_slice %0 {offsets = [0, 0], sizes = [1, 32], strides = [1, 1]} : vector<4x32xf32> to vector<1x32xf32>
    %18 = vector.extract_strided_slice %0 {offsets = [1, 0], sizes = [1, 32], strides = [1, 1]} : vector<4x32xf32> to vector<1x32xf32>
    %cst_11 = arith.constant dense<0.000000e+00> : vector<16xf32>
    %19 = vector.multi_reduction <add>, %16, %cst_11 [1] : vector<16x32xf32> to vector<16xf32>
    %20 = vector.shape_cast %19 : vector<16xf32> to vector<16x1xf32>
    %cst_12 = arith.constant 3.200000e+01 : f32
    %21 = vector.broadcast %cst_12 : f32 to vector<16x1xf32>
    %22 = arith.divf %20, %21 : vector<16x1xf32>
    %23 = vector.broadcast %22 : vector<16x1xf32> to vector<16x32xf32>
    %24 = arith.subf %16, %23 : vector<16x32xf32>
    %25 = arith.mulf %24, %24 : vector<16x32xf32>
    %cst_13 = arith.constant dense<0.000000e+00> : vector<16xf32>
    %26 = vector.multi_reduction <add>, %25, %cst_13 [1] : vector<16x32xf32> to vector<16xf32>
    %27 = vector.shape_cast %26 : vector<16xf32> to vector<16x1xf32>
    %cst_14 = arith.constant 3.200000e+01 : f32
    %28 = vector.broadcast %cst_14 : f32 to vector<16x1xf32>
    %29 = arith.divf %27, %28 : vector<16x1xf32>
    %cst_15 = arith.constant 9.99999996E-13 : f32
    %30 = vector.broadcast %cst_15 : f32 to vector<16x1xf32>
    %31 = arith.addf %29, %30 : vector<16x1xf32>
    %32 = math.rsqrt %31 : vector<16x1xf32>
    %33 = vector.broadcast %32 : vector<16x1xf32> to vector<16x32xf32>
    %34 = arith.mulf %24, %33 : vector<16x32xf32>
    %35 = vector.broadcast %17 : vector<1x32xf32> to vector<16x32xf32>
    %36 = arith.mulf %34, %35 : vector<16x32xf32>
    %37 = vector.broadcast %18 : vector<1x32xf32> to vector<16x32xf32>
    %38 = arith.addf %36, %37 : vector<16x32xf32>
    %c0_16 = arith.constant 0 : index
    %c0_17 = arith.constant 0 : index
    %39 = vector.load %arg1[%c0_16, %c0_17] : memref<1x16xi32, #tpu.memory_space<vmem>>, vector<1x16xi32>
    %40 = arith.sitofp %39 : vector<1x16xi32> to vector<1x16xf32>
    %cst_18 = arith.constant 1.000000e+00 : f32
    %41 = vector.broadcast %cst_18 : f32 to vector<1x16xf32>
    %42 = arith.subf %41, %40 : vector<1x16xf32>
    %cst_19 = arith.constant -1.000000e+04 : f32
    %43 = vector.broadcast %cst_19 : f32 to vector<1x16xf32>
    %44 = arith.mulf %42, %43 : vector<1x16xf32>
    %c0_20 = arith.constant 0 : index
    %c0_21 = arith.constant 0 : index
    %45 = vector.load %arg2[%c0_20, %c0_21] : memref<16x16xf32, #tpu.memory_space<vmem>>, vector<16x16xf32>
    %46 = vector.broadcast %44 : vector<1x16xf32> to vector<16x16xf32>
    %47 = arith.addf %45, %46 : vector<16x16xf32>
    %c0_22 = arith.constant 0 : index
    %c0_23 = arith.constant 0 : index
    %c0_24 = arith.constant 0 : index
    %48 = vector.load %arg12[%c0_22, %c0_23, %c0_24] : memref<2x8x96xf32, #tpu.memory_space<vmem>>, vector<1x8x96xf32>
    %49 = vector.shape_cast %48 : vector<1x8x96xf32> to vector<8x96xf32>
    %50 = vector.extract_strided_slice %49 {offsets = [0, 0], sizes = [1, 96], strides = [1, 1]} : vector<8x96xf32> to vector<1x96xf32>
    %51 = vector.extract_strided_slice %49 {offsets = [1, 0], sizes = [1, 32], strides = [1, 1]} : vector<8x96xf32> to vector<1x32xf32>
    %52 = vector.extract_strided_slice %49 {offsets = [2, 0], sizes = [1, 32], strides = [1, 1]} : vector<8x96xf32> to vector<1x32xf32>
    %53 = vector.extract_strided_slice %49 {offsets = [3, 0], sizes = [1, 32], strides = [1, 1]} : vector<8x96xf32> to vector<1x32xf32>
    %54 = vector.extract_strided_slice %49 {offsets = [4, 0], sizes = [1, 64], strides = [1, 1]} : vector<8x96xf32> to vector<1x64xf32>
    %55 = vector.extract_strided_slice %49 {offsets = [5, 0], sizes = [1, 32], strides = [1, 1]} : vector<8x96xf32> to vector<1x32xf32>
    %56 = vector.extract_strided_slice %49 {offsets = [6, 0], sizes = [1, 32], strides = [1, 1]} : vector<8x96xf32> to vector<1x32xf32>
    %57 = vector.extract_strided_slice %49 {offsets = [7, 0], sizes = [1, 32], strides = [1, 1]} : vector<8x96xf32> to vector<1x32xf32>
    %c0_25 = arith.constant 0 : index
    %c0_26 = arith.constant 0 : index
    %c0_27 = arith.constant 0 : index
    %58 = vector.load %arg6[%c0_25, %c0_26, %c0_27] : memref<2x32x96xbf16, #tpu.memory_space<vmem>>, vector<1x32x96xbf16>
    %59 = vector.shape_cast %58 : vector<1x32x96xbf16> to vector<32x96xbf16>
    %60 = arith.truncf %38 : vector<16x32xf32> to vector<16x32xbf16>
    %cst_28 = arith.constant dense<0.000000e+00> : vector<16x96xf32>
    %61 = tpu.matmul %60, %59, %cst_28 {dimension_numbers = #tpu.dot_dimension_numbers<[1], [0], [0], [1], [0, 0, 1, 1], [], []>} : vector<16x32xbf16>, vector<32x96xbf16>, vector<16x96xf32> -> vector<16x96xf32>
    %62 = vector.broadcast %50 : vector<1x96xf32> to vector<16x96xf32>
    %63 = arith.addf %61, %62 : vector<16x96xf32>
    %64 = vector.extract_strided_slice %63 {offsets = [0, 0], sizes = [16, 16], strides = [1, 1]} : vector<16x96xf32> to vector<16x16xf32>
    %65 = vector.extract_strided_slice %63 {offsets = [0, 16], sizes = [16, 16], strides = [1, 1]} : vector<16x96xf32> to vector<16x16xf32>
    %66 = vector.shape_cast %64 : vector<16x16xf32> to vector<1x16x16xf32>
    %67 = vector.shape_cast %65 : vector<16x16xf32> to vector<1x16x16xf32>
    %68 = tpu.concatenate %66, %67 in 0 : vector<1x16x16xf32>, vector<1x16x16xf32> -> vector<2x16x16xf32>
    %69 = vector.extract_strided_slice %63 {offsets = [0, 32], sizes = [16, 16], strides = [1, 1]} : vector<16x96xf32> to vector<16x16xf32>
    %70 = vector.extract_strided_slice %63 {offsets = [0, 48], sizes = [16, 16], strides = [1, 1]} : vector<16x96xf32> to vector<16x16xf32>
    %71 = vector.shape_cast %69 : vector<16x16xf32> to vector<1x16x16xf32>
    %72 = vector.shape_cast %70 : vector<16x16xf32> to vector<1x16x16xf32>
    %73 = tpu.concatenate %71, %72 in 0 : vector<1x16x16xf32>, vector<1x16x16xf32> -> vector<2x16x16xf32>
    %74 = vector.extract_strided_slice %63 {offsets = [0, 64], sizes = [16, 16], strides = [1, 1]} : vector<16x96xf32> to vector<16x16xf32>
    %75 = vector.extract_strided_slice %63 {offsets = [0, 80], sizes = [16, 16], strides = [1, 1]} : vector<16x96xf32> to vector<16x16xf32>
    %76 = vector.shape_cast %74 : vector<16x16xf32> to vector<1x16x16xf32>
    %77 = vector.shape_cast %75 : vector<16x16xf32> to vector<1x16x16xf32>
    %78 = tpu.concatenate %76, %77 in 0 : vector<1x16x16xf32>, vector<1x16x16xf32> -> vector<2x16x16xf32>
    %79 = arith.truncf %68 : vector<2x16x16xf32> to vector<2x16x16xbf16>
    %80 = arith.truncf %73 : vector<2x16x16xf32> to vector<2x16x16xbf16>
    "tpu.trace_start"() <{level = 10 : i32, message = "bqd,bkd->bqk"}> : () -> ()
    %cst_29 = arith.constant dense<0.000000e+00> : vector<2x16x16xf32>
    %81 = tpu.matmul %79, %80, %cst_29 {dimension_numbers = #tpu.dot_dimension_numbers<[2], [2], [1], [1], [0, 0, 0, 1, 1, 1], [0], [0]>} : vector<2x16x16xbf16>, vector<2x16x16xbf16>, vector<2x16x16xf32> -> vector<2x16x16xf32>
    "tpu.trace_stop"() : () -> ()
    %cst_30 = arith.constant 2.500000e-01 : f32
    %82 = vector.broadcast %cst_30 : f32 to vector<2x16x16xf32>
    %83 = arith.mulf %81, %82 : vector<2x16x16xf32>
    %84 = vector.shape_cast %47 : vector<16x16xf32> to vector<1x16x16xf32>
    %85 = vector.broadcast %84 : vector<1x16x16xf32> to vector<2x16x16xf32>
    %86 = arith.addf %83, %85 : vector<2x16x16xf32>
    %cst_31 = arith.constant dense<0xFF800000> : vector<2x16xf32>
    %87 = vector.multi_reduction <maximumf>, %86, %cst_31 [2] : vector<2x16x16xf32> to vector<2x16xf32>
    %88 = vector.shape_cast %87 : vector<2x16xf32> to vector<2x16x1xf32>
    %89 = vector.broadcast %88 : vector<2x16x1xf32> to vector<2x16x16xf32>
    %90 = arith.subf %86, %89 : vector<2x16x16xf32>
    %91 = math.exp %90 : vector<2x16x16xf32>
    %cst_32 = arith.constant dense<0.000000e+00> : vector<2x16xf32>
    %92 = vector.multi_reduction <add>, %91, %cst_32 [2] : vector<2x16x16xf32> to vector<2x16xf32>
    %93 = vector.shape_cast %92 : vector<2x16xf32> to vector<2x16x1xf32>
    %94 = tpu.reciprocal %93 {approx = true} : vector<2x16x1xf32> -> vector<2x16x1xf32>
    %95 = vector.broadcast %94 : vector<2x16x1xf32> to vector<2x16x16xf32>
    %96 = arith.mulf %91, %95 : vector<2x16x16xf32>
    %97 = arith.truncf %96 : vector<2x16x16xf32> to vector<2x16x16xbf16>
    %98 = arith.truncf %78 : vector<2x16x16xf32> to vector<2x16x16xbf16>
    "tpu.trace_start"() <{level = 10 : i32, message = "bqk,bkd->bqd"}> : () -> ()
    %cst_33 = arith.constant dense<0.000000e+00> : vector<2x16x16xf32>
    %99 = tpu.matmul %97, %98, %cst_33 {dimension_numbers = #tpu.dot_dimension_numbers<[2], [1], [1], [2], [0, 0, 0, 1, 1, 2], [0], [0]>} : vector<2x16x16xbf16>, vector<2x16x16xbf16>, vector<2x16x16xf32> -> vector<2x16x16xf32>
    "tpu.trace_stop"() : () -> ()
    %100 = vector.extract_strided_slice %99 {offsets = [0, 0, 0], sizes = [1, 16, 16], strides = [1, 1, 1]} : vector<2x16x16xf32> to vector<1x16x16xf32>
    %101 = vector.shape_cast %100 : vector<1x16x16xf32> to vector<16x16xf32>
    %102 = vector.extract_strided_slice %99 {offsets = [1, 0, 0], sizes = [1, 16, 16], strides = [1, 1, 1]} : vector<2x16x16xf32> to vector<1x16x16xf32>
    %103 = vector.shape_cast %102 : vector<1x16x16xf32> to vector<16x16xf32>
    %104 = tpu.concatenate %101, %103 in 1 : vector<16x16xf32>, vector<16x16xf32> -> vector<16x32xf32>
    %c0_34 = arith.constant 0 : index
    %c0_35 = arith.constant 0 : index
    %c0_36 = arith.constant 0 : index
    %105 = vector.load %arg7[%c0_34, %c0_35, %c0_36] : memref<2x32x32xbf16, #tpu.memory_space<vmem>>, vector<1x32x32xbf16>
    %106 = vector.shape_cast %105 : vector<1x32x32xbf16> to vector<32x32xbf16>
    %107 = arith.truncf %104 : vector<16x32xf32> to vector<16x32xbf16>
    %cst_37 = arith.constant dense<0.000000e+00> : vector<16x32xf32>
    %108 = tpu.matmul %107, %106, %cst_37 {dimension_numbers = #tpu.dot_dimension_numbers<[1], [0], [0], [1], [0, 0, 1, 1], [], []>} : vector<16x32xbf16>, vector<32x32xbf16>, vector<16x32xf32> -> vector<16x32xf32>
    %109 = vector.broadcast %51 : vector<1x32xf32> to vector<16x32xf32>
    %110 = arith.addf %108, %109 : vector<16x32xf32>
    %111 = arith.addf %110, %38 : vector<16x32xf32>
    %cst_38 = arith.constant dense<0.000000e+00> : vector<16xf32>
    %112 = vector.multi_reduction <add>, %111, %cst_38 [1] : vector<16x32xf32> to vector<16xf32>
    %113 = vector.shape_cast %112 : vector<16xf32> to vector<16x1xf32>
    %cst_39 = arith.constant 3.200000e+01 : f32
    %114 = vector.broadcast %cst_39 : f32 to vector<16x1xf32>
    %115 = arith.divf %113, %114 : vector<16x1xf32>
    %116 = vector.broadcast %115 : vector<16x1xf32> to vector<16x32xf32>
    %117 = arith.subf %111, %116 : vector<16x32xf32>
    %118 = arith.mulf %117, %117 : vector<16x32xf32>
    %cst_40 = arith.constant dense<0.000000e+00> : vector<16xf32>
    %119 = vector.multi_reduction <add>, %118, %cst_40 [1] : vector<16x32xf32> to vector<16xf32>
    %120 = vector.shape_cast %119 : vector<16xf32> to vector<16x1xf32>
    %cst_41 = arith.constant 3.200000e+01 : f32
    %121 = vector.broadcast %cst_41 : f32 to vector<16x1xf32>
    %122 = arith.divf %120, %121 : vector<16x1xf32>
    %cst_42 = arith.constant 9.99999996E-13 : f32
    %123 = vector.broadcast %cst_42 : f32 to vector<16x1xf32>
    %124 = arith.addf %122, %123 : vector<16x1xf32>
    %125 = math.rsqrt %124 : vector<16x1xf32>
    %126 = vector.broadcast %125 : vector<16x1xf32> to vector<16x32xf32>
    %127 = arith.mulf %117, %126 : vector<16x32xf32>
    %128 = vector.broadcast %52 : vector<1x32xf32> to vector<16x32xf32>
    %129 = arith.mulf %127, %128 : vector<16x32xf32>
    %130 = vector.broadcast %53 : vector<1x32xf32> to vector<16x32xf32>
    %131 = arith.addf %129, %130 : vector<16x32xf32>
    %c0_43 = arith.constant 0 : index
    %c0_44 = arith.constant 0 : index
    %c0_45 = arith.constant 0 : index
    %132 = vector.load %arg8[%c0_43, %c0_44, %c0_45] : memref<2x32x64xbf16, #tpu.memory_space<vmem>>, vector<1x32x64xbf16>
    %133 = vector.shape_cast %132 : vector<1x32x64xbf16> to vector<32x64xbf16>
    %134 = arith.truncf %131 : vector<16x32xf32> to vector<16x32xbf16>
    %cst_46 = arith.constant dense<0.000000e+00> : vector<16x64xf32>
    %135 = tpu.matmul %134, %133, %cst_46 {dimension_numbers = #tpu.dot_dimension_numbers<[1], [0], [0], [1], [0, 0, 1, 1], [], []>} : vector<16x32xbf16>, vector<32x64xbf16>, vector<16x64xf32> -> vector<16x64xf32>
    %136 = vector.broadcast %54 : vector<1x64xf32> to vector<16x64xf32>
    %137 = arith.addf %135, %136 : vector<16x64xf32>
    %cst_47 = arith.constant 5.000000e-01 : f32
    %138 = vector.broadcast %cst_47 : f32 to vector<16x64xf32>
    %139 = arith.mulf %138, %137 : vector<16x64xf32>
    %cst_48 = arith.constant 4.471500e-02 : f32
    %140 = vector.broadcast %cst_48 : f32 to vector<16x64xf32>
    %141 = arith.mulf %140, %137 : vector<16x64xf32>
    %142 = arith.mulf %141, %137 : vector<16x64xf32>
    %143 = arith.mulf %142, %137 : vector<16x64xf32>
    %144 = arith.addf %137, %143 : vector<16x64xf32>
    %cst_49 = arith.constant 0.797884583 : f32
    %145 = vector.broadcast %cst_49 : f32 to vector<16x64xf32>
    %146 = arith.mulf %145, %144 : vector<16x64xf32>
    %147 = math.tanh %146 : vector<16x64xf32>
    %cst_50 = arith.constant 1.000000e+00 : f32
    %148 = vector.broadcast %cst_50 : f32 to vector<16x64xf32>
    %149 = arith.addf %148, %147 : vector<16x64xf32>
    %150 = arith.mulf %139, %149 : vector<16x64xf32>
    %c0_51 = arith.constant 0 : index
    %c0_52 = arith.constant 0 : index
    %c0_53 = arith.constant 0 : index
    %151 = vector.load %arg9[%c0_51, %c0_52, %c0_53] : memref<2x64x32xbf16, #tpu.memory_space<vmem>>, vector<1x64x32xbf16>
    %152 = vector.shape_cast %151 : vector<1x64x32xbf16> to vector<64x32xbf16>
    %153 = arith.truncf %150 : vector<16x64xf32> to vector<16x64xbf16>
    %cst_54 = arith.constant dense<0.000000e+00> : vector<16x32xf32>
    %154 = tpu.matmul %153, %152, %cst_54 {dimension_numbers = #tpu.dot_dimension_numbers<[1], [0], [0], [1], [0, 0, 1, 1], [], []>} : vector<16x64xbf16>, vector<64x32xbf16>, vector<16x32xf32> -> vector<16x32xf32>
    %155 = vector.broadcast %55 : vector<1x32xf32> to vector<16x32xf32>
    %156 = arith.addf %154, %155 : vector<16x32xf32>
    %157 = arith.addf %156, %131 : vector<16x32xf32>
    %cst_55 = arith.constant dense<0.000000e+00> : vector<16xf32>
    %158 = vector.multi_reduction <add>, %157, %cst_55 [1] : vector<16x32xf32> to vector<16xf32>
    %159 = vector.shape_cast %158 : vector<16xf32> to vector<16x1xf32>
    %cst_56 = arith.constant 3.200000e+01 : f32
    %160 = vector.broadcast %cst_56 : f32 to vector<16x1xf32>
    %161 = arith.divf %159, %160 : vector<16x1xf32>
    %162 = vector.broadcast %161 : vector<16x1xf32> to vector<16x32xf32>
    %163 = arith.subf %157, %162 : vector<16x32xf32>
    %164 = arith.mulf %163, %163 : vector<16x32xf32>
    %cst_57 = arith.constant dense<0.000000e+00> : vector<16xf32>
    %165 = vector.multi_reduction <add>, %164, %cst_57 [1] : vector<16x32xf32> to vector<16xf32>
    %166 = vector.shape_cast %165 : vector<16xf32> to vector<16x1xf32>
    %cst_58 = arith.constant 3.200000e+01 : f32
    %167 = vector.broadcast %cst_58 : f32 to vector<16x1xf32>
    %168 = arith.divf %166, %167 : vector<16x1xf32>
    %cst_59 = arith.constant 9.99999996E-13 : f32
    %169 = vector.broadcast %cst_59 : f32 to vector<16x1xf32>
    %170 = arith.addf %168, %169 : vector<16x1xf32>
    %171 = math.rsqrt %170 : vector<16x1xf32>
    %172 = vector.broadcast %171 : vector<16x1xf32> to vector<16x32xf32>
    %173 = arith.mulf %163, %172 : vector<16x32xf32>
    %174 = vector.broadcast %56 : vector<1x32xf32> to vector<16x32xf32>
    %175 = arith.mulf %173, %174 : vector<16x32xf32>
    %176 = vector.broadcast %57 : vector<1x32xf32> to vector<16x32xf32>
    %177 = arith.addf %175, %176 : vector<16x32xf32>
    %c1 = arith.constant 1 : index
    %c0_60 = arith.constant 0 : index
    %c0_61 = arith.constant 0 : index
    %178 = vector.load %arg12[%c1, %c0_60, %c0_61] : memref<2x8x96xf32, #tpu.memory_space<vmem>>, vector<1x8x96xf32>
    %179 = vector.shape_cast %178 : vector<1x8x96xf32> to vector<8x96xf32>
    %180 = vector.extract_strided_slice %179 {offsets = [0, 0], sizes = [1, 96], strides = [1, 1]} : vector<8x96xf32> to vector<1x96xf32>
    %181 = vector.extract_strided_slice %179 {offsets = [1, 0], sizes = [1, 32], strides = [1, 1]} : vector<8x96xf32> to vector<1x32xf32>
    %182 = vector.extract_strided_slice %179 {offsets = [2, 0], sizes = [1, 32], strides = [1, 1]} : vector<8x96xf32> to vector<1x32xf32>
    %183 = vector.extract_strided_slice %179 {offsets = [3, 0], sizes = [1, 32], strides = [1, 1]} : vector<8x96xf32> to vector<1x32xf32>
    %184 = vector.extract_strided_slice %179 {offsets = [4, 0], sizes = [1, 64], strides = [1, 1]} : vector<8x96xf32> to vector<1x64xf32>
    %185 = vector.extract_strided_slice %179 {offsets = [5, 0], sizes = [1, 32], strides = [1, 1]} : vector<8x96xf32> to vector<1x32xf32>
    %186 = vector.extract_strided_slice %179 {offsets = [6, 0], sizes = [1, 32], strides = [1, 1]} : vector<8x96xf32> to vector<1x32xf32>
    %187 = vector.extract_strided_slice %179 {offsets = [7, 0], sizes = [1, 32], strides = [1, 1]} : vector<8x96xf32> to vector<1x32xf32>
    %c1_62 = arith.constant 1 : index
    %c0_63 = arith.constant 0 : index
    %c0_64 = arith.constant 0 : index
    %188 = vector.load %arg6[%c1_62, %c0_63, %c0_64] : memref<2x32x96xbf16, #tpu.memory_space<vmem>>, vector<1x32x96xbf16>
    %189 = vector.shape_cast %188 : vector<1x32x96xbf16> to vector<32x96xbf16>
    %190 = arith.truncf %177 : vector<16x32xf32> to vector<16x32xbf16>
    %cst_65 = arith.constant dense<0.000000e+00> : vector<16x96xf32>
    %191 = tpu.matmul %190, %189, %cst_65 {dimension_numbers = #tpu.dot_dimension_numbers<[1], [0], [0], [1], [0, 0, 1, 1], [], []>} : vector<16x32xbf16>, vector<32x96xbf16>, vector<16x96xf32> -> vector<16x96xf32>
    %192 = vector.broadcast %180 : vector<1x96xf32> to vector<16x96xf32>
    %193 = arith.addf %191, %192 : vector<16x96xf32>
    %194 = vector.extract_strided_slice %193 {offsets = [0, 0], sizes = [16, 16], strides = [1, 1]} : vector<16x96xf32> to vector<16x16xf32>
    %195 = vector.extract_strided_slice %193 {offsets = [0, 16], sizes = [16, 16], strides = [1, 1]} : vector<16x96xf32> to vector<16x16xf32>
    %196 = vector.shape_cast %194 : vector<16x16xf32> to vector<1x16x16xf32>
    %197 = vector.shape_cast %195 : vector<16x16xf32> to vector<1x16x16xf32>
    %198 = tpu.concatenate %196, %197 in 0 : vector<1x16x16xf32>, vector<1x16x16xf32> -> vector<2x16x16xf32>
    %199 = vector.extract_strided_slice %193 {offsets = [0, 32], sizes = [16, 16], strides = [1, 1]} : vector<16x96xf32> to vector<16x16xf32>
    %200 = vector.extract_strided_slice %193 {offsets = [0, 48], sizes = [16, 16], strides = [1, 1]} : vector<16x96xf32> to vector<16x16xf32>
    %201 = vector.shape_cast %199 : vector<16x16xf32> to vector<1x16x16xf32>
    %202 = vector.shape_cast %200 : vector<16x16xf32> to vector<1x16x16xf32>
    %203 = tpu.concatenate %201, %202 in 0 : vector<1x16x16xf32>, vector<1x16x16xf32> -> vector<2x16x16xf32>
    %204 = vector.extract_strided_slice %193 {offsets = [0, 64], sizes = [16, 16], strides = [1, 1]} : vector<16x96xf32> to vector<16x16xf32>
    %205 = vector.extract_strided_slice %193 {offsets = [0, 80], sizes = [16, 16], strides = [1, 1]} : vector<16x96xf32> to vector<16x16xf32>
    %206 = vector.shape_cast %204 : vector<16x16xf32> to vector<1x16x16xf32>
    %207 = vector.shape_cast %205 : vector<16x16xf32> to vector<1x16x16xf32>
    %208 = tpu.concatenate %206, %207 in 0 : vector<1x16x16xf32>, vector<1x16x16xf32> -> vector<2x16x16xf32>
    %209 = arith.truncf %198 : vector<2x16x16xf32> to vector<2x16x16xbf16>
    %210 = arith.truncf %203 : vector<2x16x16xf32> to vector<2x16x16xbf16>
    "tpu.trace_start"() <{level = 10 : i32, message = "bqd,bkd->bqk"}> : () -> ()
    %cst_66 = arith.constant dense<0.000000e+00> : vector<2x16x16xf32>
    %211 = tpu.matmul %209, %210, %cst_66 {dimension_numbers = #tpu.dot_dimension_numbers<[2], [2], [1], [1], [0, 0, 0, 1, 1, 1], [0], [0]>} : vector<2x16x16xbf16>, vector<2x16x16xbf16>, vector<2x16x16xf32> -> vector<2x16x16xf32>
    "tpu.trace_stop"() : () -> ()
    %cst_67 = arith.constant 2.500000e-01 : f32
    %212 = vector.broadcast %cst_67 : f32 to vector<2x16x16xf32>
    %213 = arith.mulf %211, %212 : vector<2x16x16xf32>
    %214 = vector.shape_cast %47 : vector<16x16xf32> to vector<1x16x16xf32>
    %215 = vector.broadcast %214 : vector<1x16x16xf32> to vector<2x16x16xf32>
    %216 = arith.addf %213, %215 : vector<2x16x16xf32>
    %cst_68 = arith.constant dense<0xFF800000> : vector<2x16xf32>
    %217 = vector.multi_reduction <maximumf>, %216, %cst_68 [2] : vector<2x16x16xf32> to vector<2x16xf32>
    %218 = vector.shape_cast %217 : vector<2x16xf32> to vector<2x16x1xf32>
    %219 = vector.broadcast %218 : vector<2x16x1xf32> to vector<2x16x16xf32>
    %220 = arith.subf %216, %219 : vector<2x16x16xf32>
    %221 = math.exp %220 : vector<2x16x16xf32>
    %cst_69 = arith.constant dense<0.000000e+00> : vector<2x16xf32>
    %222 = vector.multi_reduction <add>, %221, %cst_69 [2] : vector<2x16x16xf32> to vector<2x16xf32>
    %223 = vector.shape_cast %222 : vector<2x16xf32> to vector<2x16x1xf32>
    %224 = tpu.reciprocal %223 {approx = true} : vector<2x16x1xf32> -> vector<2x16x1xf32>
    %225 = vector.broadcast %224 : vector<2x16x1xf32> to vector<2x16x16xf32>
    %226 = arith.mulf %221, %225 : vector<2x16x16xf32>
    %227 = arith.truncf %226 : vector<2x16x16xf32> to vector<2x16x16xbf16>
    %228 = arith.truncf %208 : vector<2x16x16xf32> to vector<2x16x16xbf16>
    "tpu.trace_start"() <{level = 10 : i32, message = "bqk,bkd->bqd"}> : () -> ()
    %cst_70 = arith.constant dense<0.000000e+00> : vector<2x16x16xf32>
    %229 = tpu.matmul %227, %228, %cst_70 {dimension_numbers = #tpu.dot_dimension_numbers<[2], [1], [1], [2], [0, 0, 0, 1, 1, 2], [0], [0]>} : vector<2x16x16xbf16>, vector<2x16x16xbf16>, vector<2x16x16xf32> -> vector<2x16x16xf32>
    "tpu.trace_stop"() : () -> ()
    %230 = vector.extract_strided_slice %229 {offsets = [0, 0, 0], sizes = [1, 16, 16], strides = [1, 1, 1]} : vector<2x16x16xf32> to vector<1x16x16xf32>
    %231 = vector.shape_cast %230 : vector<1x16x16xf32> to vector<16x16xf32>
    %232 = vector.extract_strided_slice %229 {offsets = [1, 0, 0], sizes = [1, 16, 16], strides = [1, 1, 1]} : vector<2x16x16xf32> to vector<1x16x16xf32>
    %233 = vector.shape_cast %232 : vector<1x16x16xf32> to vector<16x16xf32>
    %234 = tpu.concatenate %231, %233 in 1 : vector<16x16xf32>, vector<16x16xf32> -> vector<16x32xf32>
    %c1_71 = arith.constant 1 : index
    %c0_72 = arith.constant 0 : index
    %c0_73 = arith.constant 0 : index
    %235 = vector.load %arg7[%c1_71, %c0_72, %c0_73] : memref<2x32x32xbf16, #tpu.memory_space<vmem>>, vector<1x32x32xbf16>
    %236 = vector.shape_cast %235 : vector<1x32x32xbf16> to vector<32x32xbf16>
    %237 = arith.truncf %234 : vector<16x32xf32> to vector<16x32xbf16>
    %cst_74 = arith.constant dense<0.000000e+00> : vector<16x32xf32>
    %238 = tpu.matmul %237, %236, %cst_74 {dimension_numbers = #tpu.dot_dimension_numbers<[1], [0], [0], [1], [0, 0, 1, 1], [], []>} : vector<16x32xbf16>, vector<32x32xbf16>, vector<16x32xf32> -> vector<16x32xf32>
    %239 = vector.broadcast %181 : vector<1x32xf32> to vector<16x32xf32>
    %240 = arith.addf %238, %239 : vector<16x32xf32>
    %241 = arith.addf %240, %177 : vector<16x32xf32>
    %cst_75 = arith.constant dense<0.000000e+00> : vector<16xf32>
    %242 = vector.multi_reduction <add>, %241, %cst_75 [1] : vector<16x32xf32> to vector<16xf32>
    %243 = vector.shape_cast %242 : vector<16xf32> to vector<16x1xf32>
    %cst_76 = arith.constant 3.200000e+01 : f32
    %244 = vector.broadcast %cst_76 : f32 to vector<16x1xf32>
    %245 = arith.divf %243, %244 : vector<16x1xf32>
    %246 = vector.broadcast %245 : vector<16x1xf32> to vector<16x32xf32>
    %247 = arith.subf %241, %246 : vector<16x32xf32>
    %248 = arith.mulf %247, %247 : vector<16x32xf32>
    %cst_77 = arith.constant dense<0.000000e+00> : vector<16xf32>
    %249 = vector.multi_reduction <add>, %248, %cst_77 [1] : vector<16x32xf32> to vector<16xf32>
    %250 = vector.shape_cast %249 : vector<16xf32> to vector<16x1xf32>
    %cst_78 = arith.constant 3.200000e+01 : f32
    %251 = vector.broadcast %cst_78 : f32 to vector<16x1xf32>
    %252 = arith.divf %250, %251 : vector<16x1xf32>
    %cst_79 = arith.constant 9.99999996E-13 : f32
    %253 = vector.broadcast %cst_79 : f32 to vector<16x1xf32>
    %254 = arith.addf %252, %253 : vector<16x1xf32>
    %255 = math.rsqrt %254 : vector<16x1xf32>
    %256 = vector.broadcast %255 : vector<16x1xf32> to vector<16x32xf32>
    %257 = arith.mulf %247, %256 : vector<16x32xf32>
    %258 = vector.broadcast %182 : vector<1x32xf32> to vector<16x32xf32>
    %259 = arith.mulf %257, %258 : vector<16x32xf32>
    %260 = vector.broadcast %183 : vector<1x32xf32> to vector<16x32xf32>
    %261 = arith.addf %259, %260 : vector<16x32xf32>
    %c1_80 = arith.constant 1 : index
    %c0_81 = arith.constant 0 : index
    %c0_82 = arith.constant 0 : index
    %262 = vector.load %arg8[%c1_80, %c0_81, %c0_82] : memref<2x32x64xbf16, #tpu.memory_space<vmem>>, vector<1x32x64xbf16>
    %263 = vector.shape_cast %262 : vector<1x32x64xbf16> to vector<32x64xbf16>
    %264 = arith.truncf %261 : vector<16x32xf32> to vector<16x32xbf16>
    %cst_83 = arith.constant dense<0.000000e+00> : vector<16x64xf32>
    %265 = tpu.matmul %264, %263, %cst_83 {dimension_numbers = #tpu.dot_dimension_numbers<[1], [0], [0], [1], [0, 0, 1, 1], [], []>} : vector<16x32xbf16>, vector<32x64xbf16>, vector<16x64xf32> -> vector<16x64xf32>
    %266 = vector.broadcast %184 : vector<1x64xf32> to vector<16x64xf32>
    %267 = arith.addf %265, %266 : vector<16x64xf32>
    %cst_84 = arith.constant 5.000000e-01 : f32
    %268 = vector.broadcast %cst_84 : f32 to vector<16x64xf32>
    %269 = arith.mulf %268, %267 : vector<16x64xf32>
    %cst_85 = arith.constant 4.471500e-02 : f32
    %270 = vector.broadcast %cst_85 : f32 to vector<16x64xf32>
    %271 = arith.mulf %270, %267 : vector<16x64xf32>
    %272 = arith.mulf %271, %267 : vector<16x64xf32>
    %273 = arith.mulf %272, %267 : vector<16x64xf32>
    %274 = arith.addf %267, %273 : vector<16x64xf32>
    %cst_86 = arith.constant 0.797884583 : f32
    %275 = vector.broadcast %cst_86 : f32 to vector<16x64xf32>
    %276 = arith.mulf %275, %274 : vector<16x64xf32>
    %277 = math.tanh %276 : vector<16x64xf32>
    %cst_87 = arith.constant 1.000000e+00 : f32
    %278 = vector.broadcast %cst_87 : f32 to vector<16x64xf32>
    %279 = arith.addf %278, %277 : vector<16x64xf32>
    %280 = arith.mulf %269, %279 : vector<16x64xf32>
    %c1_88 = arith.constant 1 : index
    %c0_89 = arith.constant 0 : index
    %c0_90 = arith.constant 0 : index
    %281 = vector.load %arg9[%c1_88, %c0_89, %c0_90] : memref<2x64x32xbf16, #tpu.memory_space<vmem>>, vector<1x64x32xbf16>
    %282 = vector.shape_cast %281 : vector<1x64x32xbf16> to vector<64x32xbf16>
    %283 = arith.truncf %280 : vector<16x64xf32> to vector<16x64xbf16>
    %cst_91 = arith.constant dense<0.000000e+00> : vector<16x32xf32>
    %284 = tpu.matmul %283, %282, %cst_91 {dimension_numbers = #tpu.dot_dimension_numbers<[1], [0], [0], [1], [0, 0, 1, 1], [], []>} : vector<16x64xbf16>, vector<64x32xbf16>, vector<16x32xf32> -> vector<16x32xf32>
    %285 = vector.broadcast %185 : vector<1x32xf32> to vector<16x32xf32>
    %286 = arith.addf %284, %285 : vector<16x32xf32>
    %287 = arith.addf %286, %261 : vector<16x32xf32>
    %cst_92 = arith.constant dense<0.000000e+00> : vector<16xf32>
    %288 = vector.multi_reduction <add>, %287, %cst_92 [1] : vector<16x32xf32> to vector<16xf32>
    %289 = vector.shape_cast %288 : vector<16xf32> to vector<16x1xf32>
    %cst_93 = arith.constant 3.200000e+01 : f32
    %290 = vector.broadcast %cst_93 : f32 to vector<16x1xf32>
    %291 = arith.divf %289, %290 : vector<16x1xf32>
    %292 = vector.broadcast %291 : vector<16x1xf32> to vector<16x32xf32>
    %293 = arith.subf %287, %292 : vector<16x32xf32>
    %294 = arith.mulf %293, %293 : vector<16x32xf32>
    %cst_94 = arith.constant dense<0.000000e+00> : vector<16xf32>
    %295 = vector.multi_reduction <add>, %294, %cst_94 [1] : vector<16x32xf32> to vector<16xf32>
    %296 = vector.shape_cast %295 : vector<16xf32> to vector<16x1xf32>
    %cst_95 = arith.constant 3.200000e+01 : f32
    %297 = vector.broadcast %cst_95 : f32 to vector<16x1xf32>
    %298 = arith.divf %296, %297 : vector<16x1xf32>
    %cst_96 = arith.constant 9.99999996E-13 : f32
    %299 = vector.broadcast %cst_96 : f32 to vector<16x1xf32>
    %300 = arith.addf %298, %299 : vector<16x1xf32>
    %301 = math.rsqrt %300 : vector<16x1xf32>
    %302 = vector.broadcast %301 : vector<16x1xf32> to vector<16x32xf32>
    %303 = arith.mulf %293, %302 : vector<16x32xf32>
    %304 = vector.broadcast %186 : vector<1x32xf32> to vector<16x32xf32>
    %305 = arith.mulf %303, %304 : vector<16x32xf32>
    %306 = vector.broadcast %187 : vector<1x32xf32> to vector<16x32xf32>
    %307 = arith.addf %305, %306 : vector<16x32xf32>
    %308 = vector.extract_strided_slice %307 {offsets = [0, 0], sizes = [1, 32], strides = [1, 1]} : vector<16x32xf32> to vector<1x32xf32>
    %309 = vector.extract_strided_slice %307 {offsets = [8, 0], sizes = [1, 32], strides = [1, 1]} : vector<16x32xf32> to vector<1x32xf32>
    %310 = tpu.concatenate %308, %309 in 0 : vector<1x32xf32>, vector<1x32xf32> -> vector<2x32xf32>
    %c0_97 = arith.constant 0 : index
    %c0_98 = arith.constant 0 : index
    %311 = vector.load %arg10[%c0_97, %c0_98] : memref<32x32xbf16, #tpu.memory_space<vmem>>, vector<32x32xbf16>
    %312 = arith.truncf %310 : vector<2x32xf32> to vector<2x32xbf16>
    %cst_99 = arith.constant dense<0.000000e+00> : vector<2x32xf32>
    %313 = tpu.matmul %312, %311, %cst_99 {dimension_numbers = #tpu.dot_dimension_numbers<[1], [0], [0], [1], [0, 0, 1, 1], [], []>} : vector<2x32xbf16>, vector<32x32xbf16>, vector<2x32xf32> -> vector<2x32xf32>
    %314 = vector.extract_strided_slice %0 {offsets = [2, 0], sizes = [1, 32], strides = [1, 1]} : vector<4x32xf32> to vector<1x32xf32>
    %315 = vector.broadcast %314 : vector<1x32xf32> to vector<2x32xf32>
    %316 = arith.addf %313, %315 : vector<2x32xf32>
    %317 = math.tanh %316 : vector<2x32xf32>
    %c0_100 = arith.constant 0 : index
    %c0_101 = arith.constant 0 : index
    %318 = vector.load %arg11[%c0_100, %c0_101] : memref<32x3xbf16, #tpu.memory_space<vmem>>, vector<32x3xbf16>
    %319 = arith.truncf %317 : vector<2x32xf32> to vector<2x32xbf16>
    %cst_102 = arith.constant dense<0.000000e+00> : vector<2x3xf32>
    %320 = tpu.matmul %319, %318, %cst_102 {dimension_numbers = #tpu.dot_dimension_numbers<[1], [0], [0], [1], [0, 0, 1, 1], [], []>} : vector<2x32xbf16>, vector<32x3xbf16>, vector<2x3xf32> -> vector<2x3xf32>
    %321 = vector.extract_strided_slice %0 {offsets = [3, 0], sizes = [1, 3], strides = [1, 1]} : vector<4x32xf32> to vector<1x3xf32>
    %322 = vector.broadcast %321 : vector<1x3xf32> to vector<2x3xf32>
    %323 = arith.addf %320, %322 : vector<2x3xf32>
    %c0_103 = arith.constant 0 : index
    %c0_104 = arith.constant 0 : index
    %324 = vector.load %arg14[%c0_103, %c0_104] : memref<2x3xf32, #tpu.memory_space<vmem>>, vector<2x3xf32>
    tpu.vector_store %arg14[%c0_103, %c0_104], %323 {strides = array<i32>} : memref<2x3xf32, #tpu.memory_space<vmem>>, vector<2x3xf32>,
    return
  }
}

</mosaic_0001>

<bundles_post_ra>
// kernel: bert_classifier_forward.1
= control target key start
LH: loop header
LB: loop body
LE: loop exit
PB: predicated region body
PF: predicated region fallthrough
CT: control target
= control target key end

     0   :  { %v2099_v1 = vmov 0   ;;  %v2100_v2 = vmov 0.0   ;;  %vm128_vm0 = vcmask 1041408   ;;  %vm2101_vm1 = vmmov 0   ;;  %s2579_s0 = inlined_call_operand.vmem [shape: s32[16,1], index: 0, kind: input, shape index: {}]   ;;  %s2580_s1 = inlined_call_operand.vmem [shape: s32[1,16], index: 1, kind: input, shape index: {}]   ;;  %s2581_s2 = inlined_call_operand.vmem [shape: f32[16,16], index: 2, kind: input, shape index: {}]   ;;  %s2582_s3 = inlined_call_operand.vmem [shape: bf16[100,32], index: 3, kind: input, shape index: {}]   ;;  %s2583_s4 = inlined_call_operand.vmem [shape: f32[64,32], index: 4, kind: input, shape index: {}]   ;;  %s2584_s5 = inlined_call_operand.vmem [shape: f32[2,32], index: 5, kind: input, shape index: {}]   ;;  %s2585_s6 = inlined_call_operand.vmem [shape: bf16[2,32,96], index: 6, kind: input, shape index: {}]   ;;  %s2586_s7 = inlined_call_operand.vmem [shape: bf16[2,32,32], index: 7, kind: input, shape index: {}]   ;;  %s2587_s8 = inlined_call_operand.vmem [shape: bf16[2,32,64], index: 8, kind: input, shape index: {}]   ;;  %s2588_s9 = inlined_call_operand.vmem [shape: bf16[2,64,32], index: 9, kind: input, shape index: {}]   ;;  %s2589_s10 = inlined_call_operand.vmem [shape: bf16[32,32], index: 10, kind: input, shape index: {}]   ;;  %s2590_s11 = inlined_call_operand.vmem [shape: bf16[32,3], index: 11, kind: input, shape index: {}]   ;;  %s2591_s12 = inlined_call_operand.vmem [shape: f32[2,8,96], index: 12, kind: input, shape index: {}]   ;;  %s2592_s13 = inlined_call_operand.vmem [shape: f32[4,32], index: 13, kind: input, shape index: {}]   ;;  %s2593_s14 = inlined_call_operand.hbm [shape: f32[2,3], index: 14, kind: output, shape index: {}]  }
   0x1   :  { %v50_v0 = vld [vmem:[%s2579_s0] sm:$0xff]  ;;  %1962 = vset.pattern.permute.xlu0 %v2099_v1  ;;  %1800 = vmatprep.subr.bf16.mxu0 %v2100_v2  ;;  %v1983_v3 = vld [vmem:[%s2582_s3 + $0x30] ss:$0 sps:$4 sm:$0x33]   ;;  %v51_v4 = vld [vmem:[%s2579_s0 + $0x8] sm:$0xff] }
   0x2   :  { %55 = vperm.xlu0 %1962, %v50_v0   ;;  %1818 = vmatprep.subr.bf16.mxu1 %v2100_v2  ;;  %v130_v5 = vsel %vm128_vm0, %v1983_v3, 0  ;;  %v1984_v6 = vld [vmem:[%s2582_s3 + $0x28] sm:$0xff]   ;;  %v1985_v7 = vld [vmem:[%s2582_s3 + $0x20] sm:$0xff]   ;;  %v1986_v8 = vld [vmem:[%s2582_s3 + $0x18] sm:$0xff]  }
   0x3   :  { %1801 = vmatpush3.bf16.msra.mxu0 %v130_v5  ;;  %1814 = vmatprep.mubr.msk.bf16.mxu0 %vm2101_vm1, %v2100_v2  ;;  %v1987_v9 = vld [vmem:[%s2582_s3 + $0x10] sm:$0xff]   ;;  %v1988_v10 = vld [vmem:[%s2582_s3 + $0x8] sm:$0xff]   ;;  %v1989_v11 = vld [vmem:[%s2582_s3] sm:$0xff]  }
   0x4   :  { %1802 = vmatprep.subr.bf16.mxu0 %v2100_v2  ;;  %1822 = vmatprep.mubr.msk.bf16.mxu1 %vm2101_vm1, %v2100_v2 }
   0x6   :  { %58 = vperm.xlu0 %1962, %v51_v4  }
   0x7   :  { %1803 = vmatpush3.bf16.msra.mxu0 %v1984_v6 }
   0x8   :  { %1804 = vmatprep.subr.bf16.mxu0 %v2100_v2 }
   0xb   :  { %1805 = vmatpush3.bf16.msra.mxu0 %v1985_v7 }
   0xc   :  { %1806 = vmatprep.subr.bf16.mxu0 %v2100_v2 }
   0xf   :  { %1807 = vmatpush3.bf16.msra.mxu0 %v1986_v8 }
  0x10   :  { %1808 = vmatprep.subr.bf16.mxu0 %v2100_v2 }
  0x13   :  { %1809 = vmatpush3.bf16.msra.mxu0 %v1987_v9 }
  0x14   :  { %1810 = vmatprep.subr.bf16.mxu0 %v2100_v2 }
  0x17   :  { %1811 = vmatpush3.bf16.msra.mxu0 %v1988_v10 }
  0x18   :  { %19 = vsyncpa [#allocation3], 0  ;;  %1812 = vmatprep.subr.bf16.mxu0 %v2100_v2  ;;  %v52_v12 = vlaneseq  ;;  %vm124_vm4 = vcmask 818176   ;;  %v78_v19 = vld [vmem:[%s2583_s4] sm:$0xff]  ;;  %vm173_vm5 = vcmask 261120   ;;  %v1990_v40 = vld [vmem:[%s2585_s6 + $0x8] sm:$0xff]  }
  0x19   :  { %v1670_v20 = vld [vmem:[%s2584_s5] ss:$0 sm:$0xff]  ;;  %1819 = vmatpush3.bf16.msra.mxu1 %v1990_v40  ;;  %s2102_s0 = smov 112   ;;  %s2103_s23 = smov 96   ;;  %vm306_vm6 = vcmask 130048   ;;  %vm787_vm7 = vcmask 523264  }
  0x1a   :  { %v53_v13 = vand.u32 127, %v52_v12  ;;  %v84_v21 = vadd.f32 %v1670_v20, %v78_v19  ;;  %v1991_v41 = vld [vmem:[%s2585_s6] sm:$0xff]   ;;  %1820 = vmatprep.subr.bf16.mxu1 %v2100_v2  ;;  %v2244_v48 = vshrl.u32 %v52_v12, 7  ;;  %s2105_s16 = smov 16   ;;  %vm1523_vm8 = vcmask 1040384  }
  0x1b   :  { %1813 = vmatpush3.bf16.msra.mxu0 %v1989_v11  ;;  %v49_v50 = vld [vmem:[%s2592_s13] sm:$0xf]  ;;  %vm1654_vm9 = vcmask 17408  }
  0x1c   :  { %1844 = vmatprep.subr.bf16.mxu0 %v2100_v2  ;;  %v2247_v49 = vsub.s32 0, %v2244_v48  ;;  %v2254_v54 = vsub.s32 1, %v2244_v48  ;;  %v2269_v63 = vld [vmem:[%s2591_s12] sm:$0xff] }
  0x1d   :  { %1821 = vmatpush3.bf16.msra.mxu1 %v1991_v41 }
  0x1e   :  { %1826 = vmatprep.subr.bf16.mxu1 %v2100_v2  ;;  %v204_v53 = vrot.slane %v49_v50, %v2247_v49  ;;  %v210_v58 = vrot.slane %v49_v50, %v2254_v54  ;;  %v236_v1 = vrot.slane %v2269_v63, %v2247_v49 }
  0x7d   :  { %v56_v14 = vpop.permute.xlu0 %55 }
  0x7e   :  { %vm60_vm2 = vcmp.eq.s32.totalorder %v53_v13, %v56_v14 }
  0x7f   :  { %v62_v16 = vsel %vm60_vm2, 1.0, %v2100_v2 }
  0x81   :  { %v59_v15 = vpop.permute.xlu0 %58 }
  0x82   :  { %vm61_vm3 = vcmp.eq.s32.totalorder %v53_v13, %v59_v15 }
  0x83   :  { %v63_v17 = vsel %vm61_vm3, 1.0, %v2100_v2 }
  0x84   :  { %v64_v18 = vpack.c.bf16 %v63_v17, %v62_v16 }
  0x86   :  { %1815 = vmatmul.mubr.msk.bf16.vlgmr.msra.gmra.mxu0 %vm124_vm4, %v64_v18 }
  0x87   :  { %1846 = vmatprep.mubr.msk.bf16.mxu0 %vm2101_vm1, %v2100_v2 }
 0x146   :  { %v166_v22 = vpop.f32.mrf.mxu0 }
 0x147   :  { %v167_v23 = vadd.f32 %v166_v22, %v84_v21  ;;  %v213_v22 = vld [vmem:[%s2580_s1] sm:$0x1]  ;;  %s2104_s1 = smov 64  }
 0x148   :  { %v1816_v24 = vpop.f32.mrf.mxu0 }
 0x149   :  { %v174_v25 = vsel %vm173_vm5, %v167_v23, 0.0 }
 0x14a   :  { %175 = vadd.xlane.f32.xlu1 %v174_v25  ;;  %v169_v26 = vpop.f32.mrf.mxu0 }
 0x14b   :  { %v170_v27 = vadd.f32 %v169_v26, %v84_v21 }
 0x14c   :  { %v1817_v28 = vpop.f32.mrf.mxu0 }
 0x14d   :  { %v177_v29 = vsel %vm173_vm5, %v170_v27, 0.0 }
 0x14e   :  { %178 = vadd.xlane.f32.xlu1 %v177_v29 }
 0x1d3   :  { %v176_v30 = vpop.xlane.xlu1 %175 }
 0x1d4   :  { %v181_v31 = vmul.f32 0.03125, %v176_v30 }
 0x1d6   :  { %v183_v32 = vsub.f32 %v167_v23, %v181_v31  ;;  %v214_v23 = vcvt.s32.f32 %v213_v22 }
 0x1d7   :  { %v179_v33 = vpop.xlane.xlu1 %178 }
 0x1d8   :  { %v182_v34 = vmul.f32 0.03125, %v179_v33  ;;  %v185_v35 = vmul.f32 %v183_v32, %v183_v32  ;;  %v215_v24 = vsub.f32 1.0, %v214_v23 }
 0x1da   :  { %v184_v36 = vsub.f32 %v170_v27, %v182_v34  ;;  %v187_v37 = vsel %vm173_vm5, %v185_v35, 0.0  ;;  %v216_v25 = vmul.f32 -10000.0, %v215_v24  ;;  %v217_v27 = vld [vmem:[%s2581_s2] sm:$0xff] }
 0x1db   :  { %188 = vadd.xlane.f32.xlu0 %v187_v37 }
 0x1dc   :  { %v186_v38 = vmul.f32 %v184_v36, %v184_v36  ;;  %v223_v26 = vrot.slane %v216_v25, %v2247_v49 }
 0x1de   :  { %v190_v39 = vsel %vm173_vm5, %v186_v38, 0.0  ;;  %v2301_v30 = vadd.f32 %v223_v26, %v217_v27  ;;  %v1993_v27 = vld [vmem:[%s2586_s7] sm:$0xff]  }
 0x1df   :  { %191 = vadd.xlane.f32.xlu1 %v190_v39 }
 0x264   :  { %v189_v42 = vpop.xlane.xlu0 %188 }
 0x265   :  { %v193_v43 = vmul.f32 0.03125, %v189_v42 }
 0x267   :  { %v195_v44 = vadd.f32 1e-12, %v193_v43 }
 0x268   :  { %v192_v45 = vpop.xlane.xlu1 %191 }
 0x269   :  { %2014 = vrsqrt.f32 %v195_v44  ;;  %v194_v46 = vmul.f32 0.03125, %v192_v45 }
 0x26b   :  { %v196_v47 = vadd.f32 1e-12, %v194_v46 }
 0x26d   :  { %2016 = vrsqrt.f32 %v196_v47 }
 0x276   :  { %v2015_v51 = vpop.eup %2014 }
 0x277   :  { %v199_v52 = vmul.f32 %v2015_v51, %v183_v32  ;;  %v218_v32 = vld [vmem:[%s2581_s2 + $0x8] sm:$0xff] }
 0x278   :  { %v2308_v38 = vadd.f32 %v223_v26, %v218_v32  ;;  %v1992_v26 = vld [vmem:[%s2586_s7 + $0x8] sm:$0xff]  }
 0x279   :  { %v205_v57 = vmul.f32 %v204_v53, %v199_v52 }
 0x27a   :  { %v2017_v55 = vpop.eup %2016 }
 0x27b   :  { %v200_v56 = vmul.f32 %v2017_v55, %v184_v36  ;;  %v2257_v60 = vadd.f32 %v210_v58, %v205_v57 }
 0x27d   :  { %v206_v59 = vmul.f32 %v204_v53, %v200_v56 }
 0x27f   :  { %v2259_v61 = vadd.f32 %v210_v58, %v206_v59 }
 0x281   :  { %v232_v62 = vpack.c.bf16 %v2259_v61, %v2257_v60 }
 0x283   :  { %1823 = vmatmul.mubr.msk.bf16.vlgmr.msra.gmra.mxu1 %vm173_vm5, %v232_v62 }
 0x284   :  { %1828 = vmatprep.mubr.msk.bf16.mxu1 %vm2101_vm1, %v2100_v2 }
 0x343   :  { %v286_v0 = vpop.f32.mrf.mxu1 }
 0x344   :  { %v287_v5 = vadd.f32 %v286_v0, %v236_v1 }
 0x345   :  { %v1824_v3 = vpop.f32.mrf.mxu1 }
 0x347   :  { %v289_v4 = vpop.f32.mrf.mxu1 }
 0x348   :  { %v290_v6 = vadd.f32 %v289_v4, %v236_v1 }
 0x349   :  { %v1825_v7 = vpop.f32.mrf.mxu1 }
 0x34a   :  { %v1963_v8 = vpack.i.bf16 %v290_v6, %v287_v5  ;;  %v2274_v9 = vpack.c.bf16 %v290_v6, %v287_v5 }
 0x34c   :  { %1964 = vrot.lane.b32.xlu1 %v1963_v8, %s2102_s0 }
 0x350   :  { %304 = vrot.lane.b32.xlu1 %v2274_v9, %s2103_s23 }
 0x3be   :  { %v1965_v10 = vpop.permute.xlu1 %1964 }
 0x3bf   :  { %v1967_v11 = vunpack.i.h.bf16 %v1965_v10  ;;  %v1966_v12 = vunpack.i.l.bf16 %v1965_v10 }
 0x3c1   :  { %v2278_v13 = vpack.c.bf16 %v1967_v11, %v1966_v12 }
 0x3c2   :  { %v305_v14 = vpop.permute.xlu1 %304 }
 0x3c3   :  { %v311_v15 = vsel %vm306_vm6, %v305_v14, 0  ;;  %355 = vrot.lane.b32.xlu1 %v2278_v13, %s2103_s23 }
 0x3c4   :  { %1827 = vmatpush3.bf16.xpose.msra.mxu1 %v311_v15 }
 0x3c5   :  { %1832 = vmatprep.subr.bf16.mxu1 %v2100_v2 }
 0x3cb   :  { %1829 = vmatmul.mubr.msk.bf16.vlgmr.msra.gmra.mxu1 %vm306_vm6, %v2274_v9 }
 0x3cc   :  { %1834 = vmatprep.mubr.msk.bf16.mxu1 %vm2101_vm1, %v2100_v2 }
 0x435   :  { %v356_v16 = vpop.permute.xlu1 %355 }
 0x436   :  { %v361_v17 = vsel %vm306_vm6, %v356_v16, 0 }
 0x437   :  { %1833 = vmatpush3.bf16.xpose.msra.mxu1 %v361_v17 }
 0x438   :  { %1838 = vmatprep.subr.bf16.mxu1 %v2100_v2 }
 0x43e   :  { %1835 = vmatmul.mubr.msk.bf16.vlgmr.msra.gmra.mxu1 %vm306_vm6, %v2278_v13 }
 0x43f   :  { %1840 = vmatprep.mubr.msk.bf16.mxu1 %vm2101_vm1, %v2100_v2 }
 0x48b   :  { %v347_v18 = vpop.f32.mrf.mxu1 }
 0x48c   :  { %v404_v35 = vmul.f32 0.25, %v347_v18 }
 0x48d   :  { %v1830_v19 = vpop.f32.mrf.mxu1 }
 0x48e   :  { %v408_v43 = vadd.f32 %v404_v35, %v2301_v30 }
 0x48f   :  { %v350_v20 = vpop.f32.mrf.mxu1 }
 0x490   :  { %v405_v41 = vmul.f32 0.25, %v350_v20  ;;  %v412_v44 = vsel %vm306_vm6, %v408_v43, -inf }
 0x491   :  { %v1831_v21 = vpop.f32.mrf.mxu1 }
 0x492   :  { %v409_v45 = vadd.f32 %v405_v41, %v2308_v38 }
 0x494   :  { %v415_v46 = vsel %vm306_vm6, %v409_v45, -inf }
 0x4fe   :  { %v397_v28 = vpop.f32.mrf.mxu1 }
 0x4ff   :  { %v406_v29 = vmul.f32 0.25, %v397_v28 }
 0x500   :  { %v1836_v31 = vpop.f32.mrf.mxu1 }
 0x501   :  { %v410_v33 = vadd.f32 %v406_v29, %v2301_v30 }
 0x502   :  { %v400_v34 = vpop.f32.mrf.mxu1 }
 0x503   :  { %v407_v36 = vmul.f32 0.25, %v400_v34  ;;  %v418_v37 = vsel %vm306_vm6, %v410_v33, -inf }
 0x504   :  { %419 = vmax.xlane.f32.xlu1 %v418_v37  ;;  %v1837_v39 = vpop.f32.mrf.mxu1 }
 0x505   :  { %v411_v40 = vadd.f32 %v407_v36, %v2308_v38 }
 0x507   :  { %v421_v42 = vsel %vm306_vm6, %v411_v40, -inf }
 0x508   :  { %422 = vmax.xlane.f32.xlu0 %v421_v42 }
 0x50c   :  { %413 = vmax.xlane.f32.xlu0 %v412_v44 }
 0x510   :  { %416 = vmax.xlane.f32.xlu0 %v415_v46 }
 0x58d   :  { %v420_v47 = vpop.xlane.xlu1 %419 }
 0x58e   :  { %v426_v50 = vsub.f32 %v410_v33, %v420_v47 }
 0x590   :  { %v432_v51 = vmul.f32 1.442695, %v426_v50 }
 0x591   :  { %v423_v52 = vpop.xlane.xlu0 %422 }
 0x592   :  { %2018 = vpow2.f32 %v432_v51  ;;  %v427_v53 = vsub.f32 %v411_v40, %v423_v52 }
 0x594   :  { %v434_v55 = vmul.f32 1.442695, %v427_v53 }
 0x595   :  { %v414_v56 = vpop.xlane.xlu0 %413 }
 0x596   :  { %2020 = vpow2.f32 %v434_v55  ;;  %v424_v57 = vsub.f32 %v408_v43, %v414_v56 }
 0x598   :  { %v428_v58 = vmul.f32 1.442695, %v424_v57 }
 0x599   :  { %v417_v59 = vpop.xlane.xlu0 %416 }
 0x59a   :  { %2022 = vpow2.f32 %v428_v58  ;;  %v425_v62 = vsub.f32 %v409_v45, %v417_v59  ;;  %v570_v45 = vrot.slane %v2269_v63, %v2254_v54 }
 0x59c   :  { %v430_v0 = vmul.f32 1.442695, %v425_v62 }
 0x59e   :  { %2024 = vpow2.f32 %v430_v0 }
 0x59f   :  { %v2019_v1 = vpop.eup %2018 }
 0x5a0   :  { %v442_v3 = vsel %vm306_vm6, %v2019_v1, 0.0 }
 0x5a1   :  { %443 = vadd.xlane.f32.xlu0 %v442_v3 }
 0x5a3   :  { %v2021_v4 = vpop.eup %2020 }
 0x5a4   :  { %v445_v5 = vsel %vm306_vm6, %v2021_v4, 0.0 }
 0x5a5   :  { %446 = vadd.xlane.f32.xlu0 %v445_v5 }
 0x5a7   :  { %v2023_v6 = vpop.eup %2022 }
 0x5a8   :  { %v436_v7 = vsel %vm306_vm6, %v2023_v6, 0.0 }
 0x5a9   :  { %437 = vadd.xlane.f32.xlu1 %v436_v7 }
 0x5ab   :  { %v2025_v8 = vpop.eup %2024 }
 0x5ac   :  { %v439_v10 = vsel %vm306_vm6, %v2025_v8, 0.0 }
 0x5ad   :  { %440 = vadd.xlane.f32.xlu1 %v439_v10 }
 0x5bb   :  { %505 = vrot.lane.b32.xlu0 %v2278_v13, %s2104_s1 }
 0x5bf   :  { %458 = vrot.lane.b32.xlu0 %v2274_v9, %s2104_s1 }
 0x62a   :  { %v444_v11 = vpop.xlane.xlu0 %443 }
 0x62b   :  { %2026 = vrcp.f32 %v444_v11 }
 0x62e   :  { %v447_v12 = vpop.xlane.xlu0 %446 }
 0x62f   :  { %2028 = vrcp.f32 %v447_v12 }
 0x632   :  { %v438_v14 = vpop.xlane.xlu1 %437  ;;  %v506_v15 = vpop.permute.xlu0 %505 }
 0x633   :  { %1845 = vmatpush3.bf16.msra.mxu0 %v506_v15  ;;  %2030 = vrcp.f32 %v438_v14 }
 0x634   :  { %1858 = vmatprep.subr.bf16.mxu0 %v2100_v2 }
 0x636   :  { %v441_v16 = vpop.xlane.xlu1 %440  ;;  %v459_v17 = vpop.permute.xlu0 %458 }
 0x637   :  { %2032 = vrcp.f32 %v441_v16  ;;  %1839 = vmatpush3.bf16.msra.mxu1 %v459_v17  ;;  %v2363_v17 = vsub.s32 2, %v2244_v48 }
 0x638   :  { %1850 = vmatprep.subr.bf16.mxu1 %v2100_v2  ;;  %v2027_v13 = vpop.eup %2026 }
 0x639   :  { %v454_v19 = vmul.f32 %v2027_v13, %v2019_v1 }
 0x63c   :  { %v2029_v18 = vpop.eup %2028 }
 0x63d   :  { %v455_v9 = vmul.f32 %v2029_v18, %v2021_v4 }
 0x63f   :  { %v457_v20 = vpack.c.bf16 %v455_v9, %v454_v19  ;;  %v658_v19 = vrot.slane %v2269_v63, %v2363_v17  ;;  %v2368_v9 = vsub.s32 3, %v2244_v48 }
 0x640   :  { %v2031_v21 = vpop.eup %2030 }
 0x641   :  { %1847 = vmatmul.mubr.msk.bf16.vlgmr.msra.gmra.mxu0 %vm306_vm6, %v457_v20  ;;  %v452_v23 = vmul.f32 %v2031_v21, %v2023_v6 }
 0x642   :  { %1862 = vmatprep.mubr.msk.bf16.mxu0 %vm2101_vm1, %v2100_v2 }
 0x644   :  { %v2033_v22 = vpop.eup %2032 }
 0x645   :  { %v453_v24 = vmul.f32 %v2033_v22, %v2025_v8  ;;  %v1995_v8 = vld [vmem:[%s2587_s8] sm:$0xff]  }
 0x647   :  { %v456_v25 = vpack.c.bf16 %v453_v24, %v452_v23  ;;  %v664_v23 = vrot.slane %v2269_v63, %v2368_v9 }
 0x649   :  { %1841 = vmatmul.mubr.msk.bf16.vlgmr.msra.gmra.mxu1 %vm306_vm6, %v456_v25 }
 0x64a   :  { %1854 = vmatprep.mubr.msk.bf16.mxu1 %vm2101_vm1, %v2100_v2  ;;  %1851 = vmatpush3.bf16.msra.mxu1 %v1992_v26 }
 0x64b   :  { %1852 = vmatprep.subr.bf16.mxu1 %v2100_v2 }
 0x64e   :  { %1853 = vmatpush3.bf16.msra.mxu1 %v1993_v27 }
 0x64f   :  { %1866 = vmatprep.subr.bf16.mxu1 %v2100_v2 }
 0x701   :  { %v545_v28 = vpop.f32.mrf.mxu0 }
 0x703   :  { %v1848_v29 = vpop.f32.mrf.mxu0 }
 0x704   :  { %v1997_v29 = vld [vmem:[%s2588_s9 + $0x10] sm:$0xff]  }
 0x705   :  { %v548_v31 = vpop.f32.mrf.mxu0 }
 0x706   :  { %v1968_v32 = vpack.i.bf16 %v548_v31, %v545_v28  ;;  %v1996_v28 = vld [vmem:[%s2588_s9 + $0x18] sm:$0xff]   ;;  %v1998_v31 = vld [vmem:[%s2588_s9 + $0x8] sm:$0xff]  }
 0x707   :  { %v1849_v33 = vpop.f32.mrf.mxu0 }
 0x708   :  { %1969 = vrot.lane.b32.xlu1 %v1968_v32, %s2105_s16  ;;  %v1999_v32 = vld [vmem:[%s2588_s9] sm:$0xff]   ;;  %v674_v33 = vsub.s32 4, %v2244_v48 }
 0x709   :  { %v498_v34 = vpop.f32.mrf.mxu1 }
 0x70b   :  { %v1842_v35 = vpop.f32.mrf.mxu1 }
 0x70d   :  { %v501_v36 = vpop.f32.mrf.mxu1 }
 0x70f   :  { %v1843_v37 = vpop.f32.mrf.mxu1 }
 0x77a   :  { %v1970_v39 = vpop.permute.xlu1 %1969 }
 0x77b   :  { %v1972_v40 = vunpack.i.h.bf16 %v1970_v39  ;;  %v1971_v41 = vunpack.i.l.bf16 %v1970_v39 }
 0x77d   :  { %v560_v42 = vsel %vm306_vm6, %v498_v34, %v1971_v41  ;;  %v561_v43 = vsel %vm306_vm6, %v501_v36, %v1972_v40  ;;  %v675_v34 = vrot.slane %v2269_v63, %v674_v33 }
 0x77e   :  { %v566_v44 = vpack.c.bf16 %v561_v43, %v560_v42 }
 0x780   :  { %1855 = vmatmul.mubr.msk.bf16.vlgmr.msra.gmra.mxu1 %vm173_vm5, %v566_v44 }
 0x781   :  { %1874 = vmatprep.mubr.msk.bf16.mxu1 %vm2101_vm1, %v2100_v2  ;;  %1867 = vmatpush3.bf16.msra.mxu1 %v1996_v28 }
 0x782   :  { %1868 = vmatprep.subr.bf16.mxu1 %v2100_v2 }
 0x785   :  { %1869 = vmatpush3.bf16.msra.mxu1 %v1997_v29 }
 0x786   :  { %1870 = vmatprep.subr.bf16.mxu1 %v2100_v2 }
 0x789   :  { %1871 = vmatpush3.bf16.msra.mxu1 %v1998_v31 }
 0x78a   :  { %1872 = vmatprep.subr.bf16.mxu1 %v2100_v2 }
 0x78d   :  { %1873 = vmatpush3.bf16.msra.mxu1 %v1999_v32 }
 0x78e   :  { %1892 = vmatprep.subr.bf16.mxu1 %v2100_v2 }
 0x840   :  { %v620_v46 = vpop.f32.mrf.mxu1 }
 0x841   :  { %v621_v47 = vadd.f32 %v620_v46, %v570_v45 }
 0x842   :  { %v1856_v50 = vpop.f32.mrf.mxu1 }
 0x843   :  { %v627_v51 = vadd.f32 %v621_v47, %v2257_v60 }
 0x844   :  { %v623_v52 = vpop.f32.mrf.mxu1 }
 0x845   :  { %v624_v53 = vadd.f32 %v623_v52, %v570_v45  ;;  %v629_v55 = vsel %vm173_vm5, %v627_v51, 0.0 }
 0x846   :  { %630 = vadd.xlane.f32.xlu0 %v629_v55  ;;  %v1857_v56 = vpop.f32.mrf.mxu1 }
 0x847   :  { %v628_v57 = vadd.f32 %v624_v53, %v2259_v61  ;;  %v1994_v61 = vld [vmem:[%s2587_s8 + $0x8] sm:$0xff]  }
 0x848   :  { %1859 = vmatpush3.bf16.msra.mxu0 %v1994_v61 }
 0x849   :  { %v632_v58 = vsel %vm173_vm5, %v628_v57, 0.0  ;;  %1860 = vmatprep.subr.bf16.mxu0 %v2100_v2 }
 0x84a   :  { %633 = vadd.xlane.f32.xlu1 %v632_v58 }
 0x84c   :  { %1861 = vmatpush3.bf16.msra.mxu0 %v1995_v8 }
 0x84d   :  { %1878 = vmatprep.subr.bf16.mxu0 %v2100_v2 }
 0x8cf   :  { %v631_v59 = vpop.xlane.xlu0 %630 }
 0x8d0   :  { %v635_v62 = vmul.f32 0.03125, %v631_v59 }
 0x8d2   :  { %v637_v0 = vsub.f32 %v627_v51, %v635_v62 }
 0x8d3   :  { %v634_v1 = vpop.xlane.xlu1 %633 }
 0x8d4   :  { %v636_v3 = vmul.f32 0.03125, %v634_v1  ;;  %v639_v4 = vmul.f32 %v637_v0, %v637_v0 }
 0x8d6   :  { %v638_v5 = vsub.f32 %v628_v57, %v636_v3  ;;  %v641_v60 = vsel %vm173_vm5, %v639_v4, 0.0  ;;  %v761_v4 = vsub.s32 5, %v2244_v48 }
 0x8d7   :  { %642 = vadd.xlane.f32.xlu0 %v641_v60 }
 0x8d8   :  { %v640_v6 = vmul.f32 %v638_v5, %v638_v5 }
 0x8da   :  { %v644_v7 = vsel %vm173_vm5, %v640_v6, 0.0 }
 0x8db   :  { %645 = vadd.xlane.f32.xlu0 %v644_v7 }
 0x960   :  { %v643_v10 = vpop.xlane.xlu0 %642 }
 0x961   :  { %v647_v11 = vmul.f32 0.03125, %v643_v10 }
 0x963   :  { %v649_v12 = vadd.f32 1e-12, %v647_v11 }
 0x964   :  { %v646_v14 = vpop.xlane.xlu0 %645 }
 0x965   :  { %2034 = vrsqrt.f32 %v649_v12  ;;  %v648_v15 = vmul.f32 0.03125, %v646_v14 }
 0x967   :  { %v650_v16 = vadd.f32 1e-12, %v648_v15 }
 0x969   :  { %2036 = vrsqrt.f32 %v650_v16 }
 0x972   :  { %v2035_v13 = vpop.eup %2034 }
 0x973   :  { %v653_v18 = vmul.f32 %v2035_v13, %v637_v0 }
 0x975   :  { %v659_v22 = vmul.f32 %v658_v19, %v653_v18 }
 0x976   :  { %v2037_v20 = vpop.eup %2036 }
 0x977   :  { %v654_v21 = vmul.f32 %v2037_v20, %v638_v5  ;;  %v665_v25 = vadd.f32 %v664_v23, %v659_v22  ;;  %v762_v5 = vrot.slane %v2269_v63, %v761_v4 }
 0x979   :  { %v660_v24 = vmul.f32 %v658_v19, %v654_v21 }
 0x97b   :  { %v666_v26 = vadd.f32 %v664_v23, %v660_v24 }
 0x97d   :  { %v671_v27 = vpack.c.bf16 %v666_v26, %v665_v25 }
 0x97f   :  { %1863 = vmatmul.mubr.msk.bf16.vlgmr.msra.gmra.mxu0 %vm173_vm5, %v671_v27  ;;  %v2001_v27 = vld [vmem:[%s2585_s6 + $0x10] sm:$0xff]  }
 0x980   :  { %1882 = vmatprep.mubr.msk.bf16.mxu0 %vm2101_vm1, %v2100_v2 }
 0xa3f   :  { %v725_v35 = vpop.f32.mrf.mxu0 }
 0xa40   :  { %v726_v36 = vadd.f32 %v725_v35, %v675_v34 }
 0xa41   :  { %v1864_v37 = vpop.f32.mrf.mxu0 }
 0xa42   :  { %v734_v39 = vmul.f32 0.044715, %v726_v36  ;;  %v732_v58 = vmul.f32 0.5, %v726_v36 }
 0xa43   :  { %v728_v40 = vpop.f32.mrf.mxu0 }
 0xa44   :  { %v736_v41 = vmul.f32 %v734_v39, %v726_v36  ;;  %v729_v42 = vadd.f32 %v728_v40, %v675_v34 }
 0xa45   :  { %v1865_v43 = vpop.f32.mrf.mxu0 }
 0xa46   :  { %v738_v44 = vmul.f32 %v736_v41, %v726_v36  ;;  %v735_v45 = vmul.f32 0.044715, %v729_v42  ;;  %v733_v59 = vmul.f32 0.5, %v729_v42  ;;  %v868_v41 = vsub.s32 7, %v2244_v48 }
 0xa48   :  { %v740_v46 = vadd.f32 %v738_v44, %v726_v36  ;;  %v737_v47 = vmul.f32 %v735_v45, %v729_v42  ;;  %v862_v36 = vsub.s32 6, %v2244_v48  ;;  %v869_v45 = vrot.slane %v2269_v63, %v868_v41  ;;  %v2013_v48 = vld [vmem:[%s2590_s11] sm:$0xff]  }
 0xa4a   :  { %v742_v50 = vmul.f32 0.7978846, %v740_v46  ;;  %v739_v51 = vmul.f32 %v737_v47, %v729_v42  ;;  %v863_v40 = vrot.slane %v2269_v63, %v862_v36 }
 0xa4c   :  { %2038 = vtanh.f32 %v742_v50  ;;  %v741_v52 = vadd.f32 %v739_v51, %v729_v42 }
 0xa4e   :  { %v743_v53 = vmul.f32 0.7978846, %v741_v52  ;;  %v2434_v52 = vld [vmem:[%s2591_s12 + $0x8] sm:$0xff] }
 0xa4f   :  { %v883_v63 = vrot.slane %v2434_v52, %v2247_v49 }
 0xa50   :  { %2040 = vtanh.f32 %v743_v53 }
 0xa59   :  { %v2039_v55 = vpop.eup %2038 }
 0xa5a   :  { %v746_v56 = vadd.f32 1.0, %v2039_v55 }
 0xa5c   :  { %v748_v0 = vmul.f32 %v746_v56, %v732_v58 }
 0xa5d   :  { %v2041_v57 = vpop.eup %2040 }
 0xa5e   :  { %v747_v62 = vadd.f32 1.0, %v2041_v57 }
 0xa60   :  { %v749_v1 = vmul.f32 %v747_v62, %v733_v59 }
 0xa62   :  { %v758_v3 = vpack.c.bf16 %v749_v1, %v748_v0 }
 0xa64   :  { %1875 = vmatmul.mubr.msk.bf16.vlgmr.msra.gmra.mxu1 %vm787_vm7, %v758_v3 }
 0xa65   :  { %1894 = vmatprep.mubr.msk.bf16.mxu1 %vm2101_vm1, %v2100_v2 }
 0xb24   :  { %v825_v60 = vpop.f32.mrf.mxu1 }
 0xb25   :  { %v826_v6 = vadd.f32 %v825_v60, %v762_v5 }
 0xb26   :  { %v1876_v7 = vpop.f32.mrf.mxu1 }
 0xb27   :  { %v832_v61 = vadd.f32 %v826_v6, %v665_v25 }
 0xb28   :  { %v828_v8 = vpop.f32.mrf.mxu1 }
 0xb29   :  { %v829_v10 = vadd.f32 %v828_v8, %v762_v5  ;;  %v834_v11 = vsel %vm173_vm5, %v832_v61, 0.0 }
 0xb2a   :  { %835 = vadd.xlane.f32.xlu0 %v834_v11  ;;  %v1877_v12 = vpop.f32.mrf.mxu1 }
 0xb2b   :  { %v833_v14 = vadd.f32 %v829_v10, %v666_v26  ;;  %v2000_v26 = vld [vmem:[%s2585_s6 + $0x18] sm:$0xff]  }
 0xb2c   :  { %1879 = vmatpush3.bf16.msra.mxu0 %v2000_v26 }
 0xb2d   :  { %v837_v15 = vsel %vm173_vm5, %v833_v14, 0.0  ;;  %1880 = vmatprep.subr.bf16.mxu0 %v2100_v2 }
 0xb2e   :  { %838 = vadd.xlane.f32.xlu0 %v837_v15 }
 0xb30   :  { %1881 = vmatpush3.bf16.msra.mxu0 %v2001_v27 }
 0xb31   :  { %1886 = vmatprep.subr.bf16.mxu0 %v2100_v2 }
 0xbb3   :  { %v836_v16 = vpop.xlane.xlu0 %835 }
 0xbb4   :  { %v840_v13 = vmul.f32 0.03125, %v836_v16 }
 0xbb6   :  { %v842_v18 = vsub.f32 %v832_v61, %v840_v13 }
 0xbb7   :  { %v839_v19 = vpop.xlane.xlu0 %838 }
 0xbb8   :  { %v841_v20 = vmul.f32 0.03125, %v839_v19  ;;  %v844_v21 = vmul.f32 %v842_v18, %v842_v18 }
 0xbba   :  { %v843_v22 = vsub.f32 %v833_v14, %v841_v20  ;;  %v846_v23 = vsel %vm173_vm5, %v844_v21, 0.0 }
 0xbbb   :  { %847 = vadd.xlane.f32.xlu0 %v846_v23 }
 0xbbc   :  { %v845_v24 = vmul.f32 %v843_v22, %v843_v22 }
 0xbbe   :  { %v849_v25 = vsel %vm173_vm5, %v845_v24, 0.0 }
 0xbbf   :  { %850 = vadd.xlane.f32.xlu1 %v849_v25 }
 0xc44   :  { %v848_v28 = vpop.xlane.xlu0 %847 }
 0xc45   :  { %v852_v29 = vmul.f32 0.03125, %v848_v28 }
 0xc47   :  { %v854_v31 = vadd.f32 1e-12, %v852_v29 }
 0xc48   :  { %v851_v32 = vpop.xlane.xlu1 %850 }
 0xc49   :  { %2042 = vrsqrt.f32 %v854_v31  ;;  %v853_v34 = vmul.f32 0.03125, %v851_v32 }
 0xc4b   :  { %v855_v35 = vadd.f32 1e-12, %v853_v34 }
 0xc4d   :  { %2044 = vrsqrt.f32 %v855_v35 }
 0xc56   :  { %v2043_v37 = vpop.eup %2042 }
 0xc57   :  { %v858_v39 = vmul.f32 %v2043_v37, %v842_v18 }
 0xc59   :  { %v864_v44 = vmul.f32 %v863_v40, %v858_v39 }
 0xc5a   :  { %v2045_v42 = vpop.eup %2044 }
 0xc5b   :  { %v859_v43 = vmul.f32 %v2045_v42, %v843_v22  ;;  %v2422_v47 = vadd.f32 %v869_v45, %v864_v44 }
 0xc5d   :  { %v865_v46 = vmul.f32 %v863_v40, %v859_v43 }
 0xc5f   :  { %v2424_v50 = vadd.f32 %v869_v45, %v865_v46 }
 0xc61   :  { %v879_v51 = vpack.c.bf16 %v2424_v50, %v2422_v47 }
 0xc63   :  { %1883 = vmatmul.mubr.msk.bf16.vlgmr.msra.gmra.mxu0 %vm173_vm5, %v879_v51 }
 0xc64   :  { %1888 = vmatprep.mubr.msk.bf16.mxu0 %vm2101_vm1, %v2100_v2 }
 0xd23   :  { %v933_v53 = vpop.f32.mrf.mxu0 }
 0xd24   :  { %v934_v57 = vadd.f32 %v933_v53, %v883_v63 }
 0xd25   :  { %v1884_v55 = vpop.f32.mrf.mxu0 }
 0xd27   :  { %v936_v56 = vpop.f32.mrf.mxu0 }
 0xd28   :  { %v937_v58 = vadd.f32 %v936_v56, %v883_v63 }
 0xd29   :  { %v1885_v59 = vpop.f32.mrf.mxu0 }
 0xd2a   :  { %v1973_v62 = vpack.i.bf16 %v937_v58, %v934_v57  ;;  %v2438_v0 = vpack.c.bf16 %v937_v58, %v934_v57 }
 0xd2c   :  { %1974 = vrot.lane.b32.xlu0 %v1973_v62, %s2102_s0 }
 0xd9e   :  { %v1975_v1 = vpop.permute.xlu0 %1974 }
 0xd9f   :  { %v1977_v3 = vunpack.i.h.bf16 %v1975_v1  ;;  %v1976_v5 = vunpack.i.l.bf16 %v1975_v1 }
 0xda1   :  { %v2441_v60 = vpack.c.bf16 %v1977_v3, %v1976_v5 }
 0xda3   :  { %1001 = vrot.lane.b32.xlu1 %v2441_v60, %s2103_s23 }
 0xda7   :  { %951 = vrot.lane.b32.xlu1 %v2438_v0, %s2103_s23 }
 0xe15   :  { %v1002_v49 = vpop.permute.xlu1 %1001 }
 0xe16   :  { %v1007_v6 = vsel %vm306_vm6, %v1002_v49, 0 }
 0xe17   :  { %1893 = vmatpush3.bf16.xpose.msra.mxu1 %v1007_v6 }
 0xe18   :  { %1904 = vmatprep.subr.bf16.mxu1 %v2100_v2 }
 0xe19   :  { %v952_v7 = vpop.permute.xlu1 %951 }
 0xe1a   :  { %v957_v61 = vsel %vm306_vm6, %v952_v7, 0 }
 0xe1b   :  { %1887 = vmatpush3.bf16.xpose.msra.mxu0 %v957_v61 }
 0xe1c   :  { %1898 = vmatprep.subr.bf16.mxu0 %v2100_v2 }
 0xe1e   :  { %1895 = vmatmul.mubr.msk.bf16.vlgmr.msra.gmra.mxu1 %vm306_vm6, %v2441_v60 }
 0xe1f   :  { %1906 = vmatprep.mubr.msk.bf16.mxu1 %vm2101_vm1, %v2100_v2 }
 0xe22   :  { %1889 = vmatmul.mubr.msk.bf16.vlgmr.msra.gmra.mxu0 %vm306_vm6, %v2438_v0 }
 0xe23   :  { %1900 = vmatprep.mubr.msk.bf16.mxu0 %vm2101_vm1, %v2100_v2 }
 0xede   :  { %v1043_v8 = vpop.f32.mrf.mxu1 }
 0xedf   :  { %v1052_v10 = vmul.f32 0.25, %v1043_v8 }
 0xee0   :  { %v1896_v11 = vpop.f32.mrf.mxu1 }
 0xee1   :  { %v1056_v12 = vadd.f32 %v1052_v10, %v2301_v30 }
 0xee2   :  { %v993_v14 = vpop.f32.mrf.mxu0  ;;  %v1046_v15 = vpop.f32.mrf.mxu1 }
 0xee3   :  { %v1050_v16 = vmul.f32 0.25, %v993_v14  ;;  %v1053_v13 = vmul.f32 0.25, %v1046_v15  ;;  %v1064_v18 = vsel %vm306_vm6, %v1056_v12, -inf  ;;  %v2002_v14 = vld [vmem:[%s2586_s7 + $0x18] sm:$0xff]   ;;  %v2003_v15 = vld [vmem:[%s2586_s7 + $0x10] sm:$0xff]  }
 0xee4   :  { %v1890_v19 = vpop.f32.mrf.mxu0  ;;  %1065 = vmax.xlane.f32.xlu0 %v1064_v18  ;;  %v1897_v20 = vpop.f32.mrf.mxu1 }
 0xee5   :  { %v1054_v21 = vadd.f32 %v1050_v16, %v2301_v30  ;;  %v1057_v22 = vadd.f32 %v1053_v13, %v2308_v38 }
 0xee6   :  { %v996_v23 = vpop.f32.mrf.mxu0 }
 0xee7   :  { %v1051_v24 = vmul.f32 0.25, %v996_v23  ;;  %v1058_v25 = vsel %vm306_vm6, %v1054_v21, -inf  ;;  %v1067_v26 = vsel %vm306_vm6, %v1057_v22, -inf }
 0xee8   :  { %v1891_v27 = vpop.f32.mrf.mxu0  ;;  %1059 = vmax.xlane.f32.xlu0 %v1058_v25  ;;  %1068 = vmax.xlane.f32.xlu1 %v1067_v26 }
 0xee9   :  { %v1055_v28 = vadd.f32 %v1051_v24, %v2308_v38 }
 0xeeb   :  { %v1061_v29 = vsel %vm306_vm6, %v1055_v28, -inf }
 0xeec   :  { %1062 = vmax.xlane.f32.xlu0 %v1061_v29 }
 0xf6d   :  { %v1066_v31 = vpop.xlane.xlu0 %1065 }
 0xf6e   :  { %v1072_v32 = vsub.f32 %v1056_v12, %v1066_v31 }
 0xf70   :  { %v1078_v34 = vmul.f32 1.442695, %v1072_v32  ;;  %v1217_v32 = vrot.slane %v2434_v52, %v2254_v54 }
 0xf71   :  { %v1060_v30 = vpop.xlane.xlu0 %1059  ;;  %v1069_v35 = vpop.xlane.xlu1 %1068 }
 0xf72   :  { %2046 = vpow2.f32 %v1078_v34  ;;  %v1070_v37 = vsub.f32 %v1054_v21, %v1060_v30  ;;  %v1073_v39 = vsub.f32 %v1057_v22, %v1069_v35 }
 0xf74   :  { %v1080_v40 = vmul.f32 1.442695, %v1073_v39  ;;  %v1074_v42 = vmul.f32 1.442695, %v1070_v37 }
 0xf75   :  { %v1063_v43 = vpop.xlane.xlu0 %1062 }
 0xf76   :  { %v1071_v44 = vsub.f32 %v1055_v28, %v1063_v43  ;;  %2048 = vpow2.f32 %v1080_v40 }
 0xf77   :  { %2050 = vpow2.f32 %v1074_v42 }
 0xf78   :  { %v1076_v45 = vmul.f32 1.442695, %v1071_v44 }
 0xf7a   :  { %2052 = vpow2.f32 %v1076_v45 }
 0xf7f   :  { %v2047_v38 = vpop.eup %2046 }
 0xf80   :  { %v1088_v46 = vsel %vm306_vm6, %v2047_v38, 0.0 }
 0xf81   :  { %1089 = vadd.xlane.f32.xlu1 %v1088_v46 }
 0xf83   :  { %v2049_v51 = vpop.eup %2048 }
 0xf84   :  { %v1091_v53 = vsel %vm306_vm6, %v2049_v51, 0.0  ;;  %v2051_v63 = vpop.eup %2050 }
 0xf85   :  { %1092 = vadd.xlane.f32.xlu0 %v1091_v53  ;;  %v1082_v55 = vsel %vm306_vm6, %v2051_v63, 0.0 }
 0xf87   :  { %v2053_v56 = vpop.eup %2052 }
 0xf88   :  { %v1085_v57 = vsel %vm306_vm6, %v2053_v56, 0.0 }
 0xf89   :  { %1083 = vadd.xlane.f32.xlu0 %v1082_v55 }
 0xf8d   :  { %1086 = vadd.xlane.f32.xlu0 %v1085_v57 }
 0xf92   :  { %1151 = vrot.lane.b32.xlu1 %v2441_v60, %s2104_s1 }
 0xfa3   :  { %1104 = vrot.lane.b32.xlu0 %v2438_v0, %s2104_s1 }
0x100a   :  { %v1090_v58 = vpop.xlane.xlu1 %1089 }
0x100b   :  { %2054 = vrcp.f32 %v1090_v58  ;;  %v2005_v58 = vld [vmem:[%s2587_s8 + $0x10] sm:$0xff]  }
0x100e   :  { %v1152_v59 = vpop.permute.xlu1 %1151  ;;  %v1093_v62 = vpop.xlane.xlu0 %1092 }
0x100f   :  { %1905 = vmatpush3.bf16.msra.mxu1 %v1152_v59  ;;  %2056 = vrcp.f32 %v1093_v62 }
0x1010   :  { %1918 = vmatprep.subr.bf16.mxu1 %v2100_v2 }
0x1012   :  { %v1084_v1 = vpop.xlane.xlu0 %1083 }
0x1013   :  { %2058 = vrcp.f32 %v1084_v1 }
0x1016   :  { %v1087_v3 = vpop.xlane.xlu0 %1086 }
0x1017   :  { %2060 = vrcp.f32 %v1087_v3 }
0x1018   :  { %v2055_v5 = vpop.eup %2054 }
0x1019   :  { %v1100_v60 = vmul.f32 %v2055_v5, %v2047_v38 }
0x101a   :  { %v1105_v49 = vpop.permute.xlu0 %1104 }
0x101b   :  { %1899 = vmatpush3.bf16.msra.mxu0 %v1105_v49 }
0x101c   :  { %v2057_v6 = vpop.eup %2056  ;;  %1910 = vmatprep.subr.bf16.mxu0 %v2100_v2 }
0x101d   :  { %v1101_v0 = vmul.f32 %v2057_v6, %v2049_v51 }
0x101f   :  { %v1103_v7 = vpack.c.bf16 %v1101_v0, %v1100_v60  ;;  %v1305_v0 = vrot.slane %v2434_v52, %v2363_v17 }
0x1020   :  { %v2059_v61 = vpop.eup %2058 }
0x1021   :  { %1907 = vmatmul.mubr.msk.bf16.vlgmr.msra.gmra.mxu1 %vm306_vm6, %v1103_v7  ;;  %v1098_v10 = vmul.f32 %v2059_v61, %v2051_v63 }
0x1022   :  { %1922 = vmatprep.mubr.msk.bf16.mxu1 %vm2101_vm1, %v2100_v2 }
0x1024   :  { %v2061_v8 = vpop.eup %2060 }
0x1025   :  { %v1099_v11 = vmul.f32 %v2061_v8, %v2053_v56 }
0x1027   :  { %v1102_v12 = vpack.c.bf16 %v1099_v11, %v1098_v10  ;;  %v1311_v10 = vrot.slane %v2434_v52, %v2368_v9 }
0x1029   :  { %1901 = vmatmul.mubr.msk.bf16.vlgmr.msra.gmra.mxu0 %vm306_vm6, %v1102_v12 }
0x102a   :  { %1914 = vmatprep.mubr.msk.bf16.mxu0 %vm2101_vm1, %v2100_v2  ;;  %1911 = vmatpush3.bf16.msra.mxu0 %v2002_v14 }
0x102b   :  { %1912 = vmatprep.subr.bf16.mxu0 %v2100_v2 }
0x102e   :  { %1913 = vmatpush3.bf16.msra.mxu0 %v2003_v15 }
0x102f   :  { %1926 = vmatprep.subr.bf16.mxu0 %v2100_v2 }
0x10e1   :  { %v1191_v16 = vpop.f32.mrf.mxu1 }
0x10e3   :  { %v1908_v13 = vpop.f32.mrf.mxu1 }
0x10e4   :  { %v2007_v13 = vld [vmem:[%s2588_s9 + $0x30] sm:$0xff]  }
0x10e5   :  { %v1194_v18 = vpop.f32.mrf.mxu1 }
0x10e6   :  { %v1978_v19 = vpack.i.bf16 %v1194_v18, %v1191_v16  ;;  %v2006_v16 = vld [vmem:[%s2588_s9 + $0x38] sm:$0xff]   ;;  %v2008_v18 = vld [vmem:[%s2588_s9 + $0x28] sm:$0xff]  }
0x10e7   :  { %v1909_v20 = vpop.f32.mrf.mxu1 }
0x10e8   :  { %1979 = vrot.lane.b32.xlu1 %v1978_v19, %s2105_s16  ;;  %v2009_v19 = vld [vmem:[%s2588_s9 + $0x20] sm:$0xff]   ;;  %v1323_v20 = vrot.slane %v2434_v52, %v674_v33 }
0x10e9   :  { %v1144_v21 = vpop.f32.mrf.mxu0 }
0x10eb   :  { %v1902_v22 = vpop.f32.mrf.mxu0 }
0x10ed   :  { %v1147_v23 = vpop.f32.mrf.mxu0 }
0x10ef   :  { %v1903_v24 = vpop.f32.mrf.mxu0 }
0x115a   :  { %v1980_v25 = vpop.permute.xlu1 %1979 }
0x115b   :  { %v1982_v26 = vunpack.i.h.bf16 %v1980_v25  ;;  %v1981_v27 = vunpack.i.l.bf16 %v1980_v25 }
0x115d   :  { %v1207_v28 = vsel %vm306_vm6, %v1147_v23, %v1982_v26  ;;  %v1206_v29 = vsel %vm306_vm6, %v1144_v21, %v1981_v27 }
0x115e   :  { %v1213_v31 = vpack.c.bf16 %v1207_v28, %v1206_v29 }
0x1160   :  { %1915 = vmatmul.mubr.msk.bf16.vlgmr.msra.gmra.mxu0 %vm173_vm5, %v1213_v31 }
0x1161   :  { %1934 = vmatprep.mubr.msk.bf16.mxu0 %vm2101_vm1, %v2100_v2  ;;  %1927 = vmatpush3.bf16.msra.mxu0 %v2006_v16 }
0x1162   :  { %1928 = vmatprep.subr.bf16.mxu0 %v2100_v2 }
0x1165   :  { %1929 = vmatpush3.bf16.msra.mxu0 %v2007_v13 }
0x1166   :  { %1930 = vmatprep.subr.bf16.mxu0 %v2100_v2 }
0x1169   :  { %1931 = vmatpush3.bf16.msra.mxu0 %v2008_v18 }
0x116a   :  { %1932 = vmatprep.subr.bf16.mxu0 %v2100_v2 }
0x116d   :  { %1933 = vmatpush3.bf16.msra.mxu0 %v2009_v19  ;;  %v1511_v19 = vrot.slane %v2434_v52, %v862_v36  ;;  %v2012_v36 = vld [vmem:[%s2590_s11 + $0x8] sm:$0xff]   ;;  %s2106_s11 = smov [#allocation2]  }
0x116e   :  { %s1662_s6 = sshll.u32 %s2106_s11, 4  ;;  %s1663_s6 = int_to_ptr.vmem [resolvable:$true] %s1662_s6 }
0x116f   :  { %p2082_p1 = scmp.lt.s32.totalorder %s1663_s6, %s1663_s6 }
0x1220   :  { %v1267_v34 = vpop.f32.mrf.mxu0 }
0x1221   :  { %v1268_v30 = vadd.f32 %v1267_v34, %v1217_v32 }
0x1222   :  { %v1916_v35 = vpop.f32.mrf.mxu0 }
0x1223   :  { %v1274_v37 = vadd.f32 %v1268_v30, %v2422_v47 }
0x1224   :  { %v1270_v39 = vpop.f32.mrf.mxu0 }
0x1225   :  { %v1271_v40 = vadd.f32 %v1270_v39, %v1217_v32  ;;  %v1276_v42 = vsel %vm173_vm5, %v1274_v37, 0.0 }
0x1226   :  { %1277 = vadd.xlane.f32.xlu1 %v1276_v42  ;;  %v1917_v43 = vpop.f32.mrf.mxu0 }
0x1227   :  { %v1275_v44 = vadd.f32 %v1271_v40, %v2424_v50  ;;  %v2004_v50 = vld [vmem:[%s2587_s8 + $0x18] sm:$0xff]  }
0x1228   :  { %1919 = vmatpush3.bf16.msra.mxu1 %v2004_v50 }
0x1229   :  { %v1279_v45 = vsel %vm173_vm5, %v1275_v44, 0.0  ;;  %1920 = vmatprep.subr.bf16.mxu1 %v2100_v2 }
0x122a   :  { %1280 = vadd.xlane.f32.xlu0 %v1279_v45 }
0x122c   :  { %1921 = vmatpush3.bf16.msra.mxu1 %v2005_v58 }
0x122d   :  { %1938 = vmatprep.subr.bf16.mxu1 %v2100_v2 }
0x12af   :  { %v1278_v38 = vpop.xlane.xlu1 %1277 }
0x12b0   :  { %v1282_v46 = vmul.f32 0.03125, %v1278_v38 }
0x12b2   :  { %v1284_v51 = vsub.f32 %v1274_v37, %v1282_v46 }
0x12b3   :  { %v1281_v54 = vpop.xlane.xlu0 %1280 }
0x12b4   :  { %v1283_v53 = vmul.f32 0.03125, %v1281_v54  ;;  %v1286_v63 = vmul.f32 %v1284_v51, %v1284_v51  ;;  %v1411_v54 = vrot.slane %v2434_v52, %v761_v4 }
0x12b6   :  { %v1285_v55 = vsub.f32 %v1275_v44, %v1283_v53  ;;  %v1288_v47 = vsel %vm173_vm5, %v1286_v63, 0.0 }
0x12b7   :  { %1289 = vadd.xlane.f32.xlu1 %v1288_v47 }
0x12b8   :  { %v1287_v56 = vmul.f32 %v1285_v55, %v1285_v55 }
0x12ba   :  { %v1291_v57 = vsel %vm173_vm5, %v1287_v56, 0.0 }
0x12bb   :  { %1292 = vadd.xlane.f32.xlu1 %v1291_v57 }
0x1340   :  { %v1290_v59 = vpop.xlane.xlu1 %1289 }
0x1341   :  { %v1294_v62 = vmul.f32 0.03125, %v1290_v59 }
0x1343   :  { %v1296_v1 = vadd.f32 1e-12, %v1294_v62 }
0x1344   :  { %v1293_v3 = vpop.xlane.xlu1 %1292 }
0x1345   :  { %2062 = vrsqrt.f32 %v1296_v1  ;;  %v1295_v5 = vmul.f32 0.03125, %v1293_v3 }
0x1347   :  { %v1297_v49 = vadd.f32 1e-12, %v1295_v5 }
0x1349   :  { %2064 = vrsqrt.f32 %v1297_v49 }
0x1352   :  { %v2063_v6 = vpop.eup %2062 }
0x1353   :  { %v1300_v60 = vmul.f32 %v2063_v6, %v1284_v51 }
0x1355   :  { %v1306_v8 = vmul.f32 %v1305_v0, %v1300_v60 }
0x1356   :  { %v2065_v7 = vpop.eup %2064 }
0x1357   :  { %v1301_v61 = vmul.f32 %v2065_v7, %v1285_v55  ;;  %v1312_v12 = vadd.f32 %v1311_v10, %v1306_v8  ;;  %v2010_v8 = vld [vmem:[%s2589_s10 + $0x8] sm:$0xff]  }
0x1359   :  { %v1307_v11 = vmul.f32 %v1305_v0, %v1301_v61 }
0x135b   :  { %v1313_v14 = vadd.f32 %v1311_v10, %v1307_v11  ;;  %v2011_v10 = vld [vmem:[%s2589_s10] sm:$0xff]  }
0x135d   :  { %v1319_v15 = vpack.c.bf16 %v1313_v14, %v1312_v12 }
0x135f   :  { %1923 = vmatmul.mubr.msk.bf16.vlgmr.msra.gmra.mxu1 %vm173_vm5, %v1319_v15 }
0x1360   :  { %1942 = vmatprep.mubr.msk.bf16.mxu1 %vm2101_vm1, %v2100_v2  ;;  %1939 = vmatpush3.bf16.msra.mxu1 %v2010_v8 }
0x1361   :  { %1940 = vmatprep.subr.bf16.mxu1 %v2100_v2 }
0x1364   :  { %1941 = vmatpush3.bf16.msra.mxu1 %v2011_v10 }
0x1365   :  { %1946 = vmatprep.subr.bf16.mxu1 %v2100_v2 }
0x141f   :  { %v1373_v21 = vpop.f32.mrf.mxu1 }
0x1420   :  { %v1374_v22 = vadd.f32 %v1373_v21, %v1323_v20 }
0x1421   :  { %v1924_v23 = vpop.f32.mrf.mxu1 }
0x1422   :  { %v1382_v24 = vmul.f32 0.044715, %v1374_v22  ;;  %v1380_v43 = vmul.f32 0.5, %v1374_v22 }
0x1423   :  { %v1376_v25 = vpop.f32.mrf.mxu1 }
0x1424   :  { %v1384_v26 = vmul.f32 %v1382_v24, %v1374_v22  ;;  %v1377_v27 = vadd.f32 %v1376_v25, %v1323_v20  ;;  %v1517_v25 = vrot.slane %v2434_v52, %v868_v41  ;;  %v2076_v41 = vld [vmem:[%s2592_s13] sm:$0xf]  ;;  %s2077_s13 = scalar_lea.vmem %s1663_s6, 32 }
0x1425   :  { %v1925_v28 = vpop.f32.mrf.mxu1  ;;  %v1533_v52 = vrot.slane %v2076_v41, %v2363_v17  ;;  %p2078_p0 = scmp.ne.s32.totalorder %s1663_s6, %s2077_s13  ;;  %p2083_p2 = scmp.lt.s32.totalorder %s2077_s13, %s2077_s13 }
0x1426   :  { %v1386_v29 = vmul.f32 %v1384_v26, %v1374_v22  ;;  %v1383_v31 = vmul.f32 0.044715, %v1377_v27  ;;  %v1381_v44 = vmul.f32 0.5, %v1377_v27 }
0x1427   :  { %p2084_p3 = por %p2083_p2, %p2082_p1 }
0x1428   :  { %v1388_v32 = vadd.f32 %v1386_v29, %v1374_v22  ;;  %v1385_v34 = vmul.f32 %v1383_v31, %v1377_v27 }
0x1429   :  { %p2085_p4 = pnand %p2084_p3, %p2078_p0 }
0x142a   :  { %v1390_v30 = vmul.f32 0.7978846, %v1388_v32  ;;  %v1387_v35 = vmul.f32 %v1385_v34, %v1377_v27 }
0x142c   :  { %2066 = vtanh.f32 %v1390_v30  ;;  %v1389_v37 = vadd.f32 %v1387_v35, %v1377_v27 }
0x142e   :  { %v1391_v39 = vmul.f32 0.7978846, %v1389_v37 }
0x1430   :  { %2068 = vtanh.f32 %v1391_v39 }
0x1439   :  { %v2067_v40 = vpop.eup %2066 }
0x143a   :  { %v1394_v33 = vadd.f32 1.0, %v2067_v40 }
0x143c   :  { %v1396_v38 = vmul.f32 %v1394_v33, %v1380_v43 }
0x143d   :  { %v2069_v42 = vpop.eup %2068 }
0x143e   :  { %v1395_v45 = vadd.f32 1.0, %v2069_v42 }
0x1440   :  { %v1397_v46 = vmul.f32 %v1395_v45, %v1381_v44 }
0x1442   :  { %v1407_v51 = vpack.c.bf16 %v1397_v46, %v1396_v38 }
0x1444   :  { %1935 = vmatmul.mubr.msk.bf16.vlgmr.msra.gmra.mxu0 %vm787_vm7, %v1407_v51 }
0x1504   :  { %v1473_v53 = vpop.f32.mrf.mxu0 }
0x1505   :  { %v1474_v63 = vadd.f32 %v1473_v53, %v1411_v54 }
0x1506   :  { %v1936_v55 = vpop.f32.mrf.mxu0 }
0x1507   :  { %v1480_v47 = vadd.f32 %v1474_v63, %v1312_v12 }
0x1508   :  { %v1476_v56 = vpop.f32.mrf.mxu0 }
0x1509   :  { %v1477_v57 = vadd.f32 %v1476_v56, %v1411_v54  ;;  %v1482_v50 = vsel %vm173_vm5, %v1480_v47, 0.0 }
0x150a   :  { %1483 = vadd.xlane.f32.xlu1 %v1482_v50  ;;  %v1937_v58 = vpop.f32.mrf.mxu0 }
0x150b   :  { %v1481_v59 = vadd.f32 %v1477_v57, %v1313_v14 }
0x150d   :  { %v1485_v62 = vsel %vm173_vm5, %v1481_v59, 0.0 }
0x150e   :  { %1486 = vadd.xlane.f32.xlu0 %v1485_v62 }
0x1593   :  { %v1484_v1 = vpop.xlane.xlu1 %1483 }
0x1594   :  { %v1488_v3 = vmul.f32 0.03125, %v1484_v1 }
0x1596   :  { %v1490_v5 = vsub.f32 %v1480_v47, %v1488_v3 }
0x1597   :  { %v1487_v49 = vpop.xlane.xlu0 %1486 }
0x1598   :  { %v1489_v6 = vmul.f32 0.03125, %v1487_v49  ;;  %v1492_v4 = vmul.f32 %v1490_v5, %v1490_v5 }
0x159a   :  { %v1491_v60 = vsub.f32 %v1481_v59, %v1489_v6  ;;  %v1494_v0 = vsel %vm173_vm5, %v1492_v4, 0.0 }
0x159b   :  { %1495 = vadd.xlane.f32.xlu1 %v1494_v0 }
0x159c   :  { %v1493_v7 = vmul.f32 %v1491_v60, %v1491_v60 }
0x159e   :  { %v1497_v61 = vsel %vm173_vm5, %v1493_v7, 0.0 }
0x159f   :  { %1498 = vadd.xlane.f32.xlu0 %v1497_v61 }
0x1624   :  { %v1496_v11 = vpop.xlane.xlu1 %1495 }
0x1625   :  { %v1500_v12 = vmul.f32 0.03125, %v1496_v11 }
0x1627   :  { %v1502_v14 = vadd.f32 1e-12, %v1500_v12 }
0x1628   :  { %v1499_v15 = vpop.xlane.xlu0 %1498 }
0x1629   :  { %2070 = vrsqrt.f32 %v1502_v14  ;;  %v1501_v16 = vmul.f32 0.03125, %v1499_v15 }
0x162b   :  { %v1503_v13 = vadd.f32 1e-12, %v1501_v16 }
0x162d   :  { %2072 = vrsqrt.f32 %v1503_v13 }
0x1636   :  { %v2071_v18 = vpop.eup %2070 }
0x1637   :  { %v1506_v20 = vmul.f32 %v2071_v18, %v1490_v5 }
0x1639   :  { %v1512_v23 = vmul.f32 %v1511_v19, %v1506_v20 }
0x163a   :  { %v2073_v21 = vpop.eup %2072 }
0x163b   :  { %v1507_v22 = vmul.f32 %v2073_v21, %v1491_v60  ;;  %v1518_v27 = vadd.f32 %v1517_v25, %v1512_v23 }
0x163d   :  { %v1513_v24 = vmul.f32 %v1511_v19, %v1507_v22 }
0x163f   :  { %v1519_v26 = vadd.f32 %v1517_v25, %v1513_v24 }
0x1641   :  { %v1521_v28 = vrot.slane %v1519_v26, 7 }
0x1643   :  { %v1524_v29 = vsel %vm1523_vm8, %v1518_v27, %v1521_v28 }
0x1644   :  { %v1529_v31 = vpack.c.bf16 %v1524_v29, %v1524_v29 }
0x1646   :  { %1943 = vmatmul.mubr.msk.bf16.vlgmr.msra.gmra.mxu1 %vm173_vm5, %v1529_v31 }
0x1647   :  { %1950 = vmatprep.mubr.msk.bf16.mxu1 %vm2101_vm1, %v2100_v2  ;;  %1947 = vmatpush3.bf16.msra.mxu1 %v2012_v36 }
0x1648   :  { %1948 = vmatprep.subr.bf16.mxu1 %v2100_v2  ;;  %v1598_v2 = vrot.slane %v2076_v41, %v2368_v9 }
0x164b   :  { %1949 = vmatpush3.bf16.msra.mxu1 %v2013_v48 }
0x1706   :  { %v1583_v32 = vpop.f32.mrf.mxu1 }
0x1707   :  { %v1584_v34 = vadd.f32 %v1583_v32, %v1533_v52 }
0x1708   :  { %v1944_v30 = vpop.f32.mrf.mxu1 }
0x1709   :  { %2074 = vtanh.f32 %v1584_v34 }
0x170a   :  { %v1586_v35 = vpop.f32.mrf.mxu1 }
0x170c   :  { %v1945_v37 = vpop.f32.mrf.mxu1 }
0x1716   :  { %v2075_v39 = vpop.eup %2074 }
0x1717   :  { %v1594_v40 = vpack.c.bf16 %v2075_v39, %v2075_v39 }
0x1719   :  { %1951 = vmatmul.mubr.msk.bf16.vlgmr.msra.gmra.mxu1 %vm173_vm5, %v1594_v40 }
0x17d9   :  { %v1648_v33 = vpop.f32.mrf.mxu1 }
0x17da   :  { %v1649_v42 = vadd.f32 %v1648_v33, %v1598_v2 }
0x17db   :  { %v1952_v43 = vpop.f32.mrf.mxu1 }
0x17dc   :  { %1655 = vst.msk [vmem:[#allocation2] sm:$0x3] %vm1654_vm9, %v1649_v42 }
0x17dd   :  { %v1651_v17 = vpop.f32.mrf.mxu1 }
0x17de   :  { %2088 = shalt.err (!%p2085_p4)
}
0x17df   :  { %1665 = dma.vmem_to_hbm [thread:$0]  %s1663_s6, 32, %s2593_s14, [#allocation3]   ;;  %v1953_v9 = vpop.f32.mrf.mxu1 }
0x17e0   :  { %2097 = dma.done.wait [#allocation3], 32  }
0x17e1   :  { %2098 = vsyncadd [#allocation3], 4294967264 }
0x17e2   :  { %1669 = vsyncpa [#allocation3], 1 }

</bundles_post_ra>
